<compile_context>
chip_gen: v5e
topology: v5e:2x2
jax: 0.10.0
libtpu: 0.0.40
codegen_flags: <defaults>
</compile_context>

<pallas_src>
import math

import jax
import jax.numpy as jnp
from jax.experimental import pallas as pl
from jax.experimental.pallas import tpu as pltpu

# ---------------- config (small, synthetic "bert") ----------------
BATCH = 2
SEQ = 8
HIDDEN = 32
NUM_HEADS = 2
HEAD_DIM = HIDDEN // NUM_HEADS
INTERMEDIATE = 64
NUM_LAYERS = 2
VOCAB = 50
MAX_POS = 16
NUM_CLASSES = 3
LN_EPS = 1e-12
DROPOUT_RATE = 0.1  # nn.Dropout is identity at inference time

PADW = 128                                   # lane-dense width for the vecs pack / output
VEC_ROWS_PER_LAYER = 8                       # bqkv, bo, ln1g, ln1b, bi, bo2, ln2g, ln2b
NUM_VEC_ROWS = 2 + NUM_LAYERS * VEC_ROWS_PER_LAYER + 2


# ---------------- in-kernel helpers ----------------
def _layernorm(v, g, b):
    mu = jnp.mean(v, axis=-1, keepdims=True)
    var = jnp.mean((v - mu) * (v - mu), axis=-1, keepdims=True)
    return (v - mu) * jax.lax.rsqrt(var + LN_EPS) * g + b


def _gelu_exact(x):
    # exact (erf) GELU, matching HF BERT's "gelu" activation
    # (kept exact; tanh-approx would move work to the EUP at real FFN widths but changes numerics)
    return 0.5 * x * (1.0 + jax.lax.erf(x * (1.0 / math.sqrt(2.0))))


# ---------------- Pallas kernel: full BERT encoder + pooler + classifier ----------------
def bert_fused_kernel(emb_ref, mask_ref, vecs_ref, wl_ref, wh_ref, out_ref):
    H, HD, NH, I = HIDDEN, HEAD_DIM, NUM_HEADS, INTERMEDIATE
    BS = BATCH * SEQ

    vecs = vecs_ref[...]            # (NUM_VEC_ROWS, 128) lane-padded vector pack
    mask2d = mask_ref[...]          # (BS, BS) block-diagonal + key-padding additive mask

    def vrow(r, w):                 # row r of the vecs pack, first w lanes -> (1, w)
        return vecs[r:r + 1, 0:w]

    # embeddings already summed in the wrapper; LayerNorm here
    x = _layernorm(emb_ref[...], vrow(0, H), vrow(1, H))     # (BS, H) stays resident

    row = 2
    for l in range(NUM_LAYERS):                              # static unroll over layers
        bqkv = vrow(row + 0, 3 * H)                          # (1, 3H); q bias pre-scaled
        bo   = vrow(row + 1, H)
        ln1g = vrow(row + 2, H)
        ln1b = vrow(row + 3, H)
        bi   = vrow(row + 4, I)
        bo2  = vrow(row + 5, H)
        ln2g = vrow(row + 6, H)
        ln2b = vrow(row + 7, H)
        row += VEC_ROWS_PER_LAYER

        wl = wl_ref[l]                                       # (2H + I + H, 3H) = (160, 96)
        wqkv = wl[0:H, 0:3 * H]                              # (H, 3H)  [W_q*scale | W_k | W_v]
        wi   = wl[H:2 * H, 0:I]                              # (H, I)
        wo2  = wl[2 * H:2 * H + I, 0:H]                      # (I, H)
        wo   = wl[2 * H + I:2 * H + I + H, 0:H]              # (H, H)

        # --- multi-head self attention: ONE fused QKV matmul, then static lane slices ---
        # NOTE: at real BERT scale cast dot operands to bf16 (keep f32 accumulate +
        # f32 LN/softmax/GELU); at H=32 we stay f32 for fidelity.
        qkv = jnp.dot(x, wqkv, preferred_element_type=jnp.float32) + bqkv   # (BS, 3H)

        attn = jnp.zeros((BS, H), jnp.float32)
        for n in range(NH):                                  # static unroll over heads
            q = qkv[:, n * HD:(n + 1) * HD]                  # (BS, HD), scale pre-folded
            k = qkv[:, H + n * HD:H + (n + 1) * HD]
            v = qkv[:, 2 * H + n * HD:2 * H + (n + 1) * HD]
            s = jnp.dot(q, k.T, preferred_element_type=jnp.float32) + mask2d  # (BS, BS)
            m = jnp.max(s, axis=-1, keepdims=True)
            p = jnp.exp(s - m)
            p = p * pl.reciprocal(jnp.sum(p, axis=-1, keepdims=True), approx=True)
            ctx = jnp.dot(p, v, preferred_element_type=jnp.float32)          # (BS, HD)
            # fold this head's context straight through its W_O row-block
            attn = attn + jnp.dot(ctx, wo[n * HD:(n + 1) * HD, :],
                                  preferred_element_type=jnp.float32)

        h1 = _layernorm(x + attn + bo, ln1g, ln1b)

        # --- feed forward ---
        ff = _gelu_exact(jnp.dot(h1, wi, preferred_element_type=jnp.float32) + bi)
        ff_out = jnp.dot(ff, wo2, preferred_element_type=jnp.float32) + bo2
        x = _layernorm(h1 + ff_out, ln2g, ln2b)

    # --- pooler (tanh) + dropout(identity at inference) + classifier, fused ---
    # Computed for every token row (free at this size); wrapper keeps the [CLS] rows.
    pool_b = vrow(row, H)
    cls_b = vrow(row + 1, PADW)                              # zero-padded to 128 lanes
    wh = wh_ref[...]                                         # (H, H + 128)
    pool_w = wh[:, 0:H]
    cls_w = wh[:, H:H + PADW]                                # zero-padded classifier weights
    pooled = jnp.tanh(jnp.dot(x, pool_w, preferred_element_type=jnp.float32) + pool_b)
    # TODO(synk): training-mode dropout (rate=0.1) would need pltpu.prng_*; inference is identity.
    out_ref[...] = jnp.dot(pooled, cls_w, preferred_element_type=jnp.float32) + cls_b


# ---------------- parameter init (deterministic, BERT-style N(0, 0.02)) ----------------
def init_params(key):
    def nrm(k, shape):
        return 0.02 * jax.random.normal(k, shape, dtype=jnp.float32)

    keys = iter(jax.random.split(key, 64))
    params = {
        "word_emb": nrm(next(keys), (VOCAB, HIDDEN)),
        "pos_emb": nrm(next(keys), (MAX_POS, HIDDEN)),
        "type_emb": nrm(next(keys), (2, HIDDEN)),
        "emb_ln_g": jnp.ones((1, HIDDEN), jnp.float32),
        "emb_ln_b": jnp.zeros((1, HIDDEN), jnp.float32),
        "layers": [],
        "pool_w": nrm(next(keys), (HIDDEN, HIDDEN)),
        "pool_b": jnp.zeros((1, HIDDEN), jnp.float32),
        "cls_w": nrm(next(keys), (HIDDEN, NUM_CLASSES)),
        "cls_b": jnp.zeros((1, NUM_CLASSES), jnp.float32),
    }
    for _ in range(NUM_LAYERS):
        lp = {
            "wq": nrm(next(keys), (HIDDEN, HIDDEN)),
            "bq": jnp.zeros((1, HIDDEN), jnp.float32),
            "wk": nrm(next(keys), (HIDDEN, HIDDEN)),
            "bk": jnp.zeros((1, HIDDEN), jnp.float32),
            "wv": nrm(next(keys), (HIDDEN, HIDDEN)),
            "bv": jnp.zeros((1, HIDDEN), jnp.float32),
            "wo": nrm(next(keys), (HIDDEN, HIDDEN)),
            "bo": jnp.zeros((1, HIDDEN), jnp.float32),
            "ln1_g": jnp.ones((1, HIDDEN), jnp.float32),
            "ln1_b": jnp.zeros((1, HIDDEN), jnp.float32),
            "wi": nrm(next(keys), (HIDDEN, INTERMEDIATE)),
            "bi": jnp.zeros((1, INTERMEDIATE), jnp.float32),
            "wo2": nrm(next(keys), (INTERMEDIATE, HIDDEN)),
            "bo2": jnp.zeros((1, HIDDEN), jnp.float32),
            "ln2_g": jnp.ones((1, HIDDEN), jnp.float32),
            "ln2_b": jnp.zeros((1, HIDDEN), jnp.float32),
        }
        params["layers"].append(lp)
    return params


# ---------------- one-time host-side re-layout into the fused kernel's format ----------------
def pack_params(params):
    scale = 1.0 / math.sqrt(HEAD_DIM)
    H, I = HIDDEN, INTERMEDIATE

    def pad_row(v, w=PADW):          # (1, n) -> (1, w), zero-padded lanes
        return jnp.pad(v, ((0, 0), (0, w - v.shape[1])))

    vec_rows = [pad_row(params["emb_ln_g"]), pad_row(params["emb_ln_b"])]
    w_layers = []
    for lp in params["layers"]:
        wq = lp["wq"] * scale        # fold 1/sqrt(HD) into the q projection
        bq = lp["bq"] * scale
        wqkv = jnp.concatenate([wq, lp["wk"], lp["wv"]], axis=1)     # (H, 3H)
        bqkv = jnp.concatenate([bq, lp["bk"], lp["bv"]], axis=1)     # (1, 3H)
        vec_rows += [
            pad_row(bqkv), pad_row(lp["bo"]), pad_row(lp["ln1_g"]), pad_row(lp["ln1_b"]),
            pad_row(lp["bi"]), pad_row(lp["bo2"]), pad_row(lp["ln2_g"]), pad_row(lp["ln2_b"]),
        ]
        wi_p = jnp.pad(lp["wi"], ((0, 0), (0, 3 * H - I)))           # (H, 3H)
        wo2_p = jnp.pad(lp["wo2"], ((0, 0), (0, 3 * H - H)))         # (I, 3H)
        wo_p = jnp.pad(lp["wo"], ((0, 0), (0, 3 * H - H)))           # (H, 3H)
        w_layers.append(jnp.concatenate([wqkv, wi_p, wo2_p, wo_p], axis=0))  # (160, 96)

    vec_rows += [pad_row(params["pool_b"]), pad_row(params["cls_b"])]

    cls_w_p = jnp.pad(params["cls_w"], ((0, 0), (0, PADW - NUM_CLASSES)))    # (H, 128)
    w_head = jnp.concatenate([params["pool_w"], cls_w_p], axis=1)            # (H, H+128)

    return {
        "word_emb": params["word_emb"],
        "pos_emb": params["pos_emb"],
        "type_emb": params["type_emb"],
        "vecs": jnp.concatenate(vec_rows, axis=0),   # (NUM_VEC_ROWS, 128)
        "w_layer": jnp.stack(w_layers),              # (L, 160, 96)
        "w_head": w_head,                            # (H, H+128)
    }


# ---------------- full forward (glue in JAX, everything else in ONE Pallas kernel) ----------------
@jax.jit
def bert_classifier_forward(input_ids, attention_mask, kp):
    B, S = input_ids.shape
    BS = B * S
    # embedding gather (data-dependent vocab lookup) + sum — glue, plain JAX
    pos_ids = jnp.arange(S)
    emb = (
        kp["word_emb"][input_ids]
        + kp["pos_emb"][pos_ids][None, :, :]
        + kp["type_emb"][0][None, None, :]           # token_type_ids == 0
    )
    emb2 = emb.reshape(BS, HIDDEN)                   # fold batch into the sublane axis

    # combined (BS, BS) additive mask: block-diagonal cross-batch blocking merged with the
    # classic BERT key-padding mask.  Large FINITE negatives (added before the row max),
    # so no -inf - (-inf) NaNs; cross-batch / padded keys underflow to exactly 0 after exp.
    row_batch = jnp.repeat(jnp.arange(B), S)                                       # (BS,)
    cross = jnp.where(row_batch[:, None] == row_batch[None, :], 0.0, -10000.0)     # (BS, BS)
    key_pad = ((1.0 - attention_mask.astype(jnp.float32)) * -10000.0).reshape(BS)  # (BS,)
    mask2d = (cross + key_pad[None, :]).astype(jnp.float32)                        # (BS, BS)

    operands = (emb2, mask2d, kp["vecs"], kp["w_layer"], kp["w_head"])
    vmem_spec = pl.BlockSpec(memory_space=pltpu.MemorySpace.VMEM)  # whole array resident in VMEM
    logits_all = pl.pallas_call(
        bert_fused_kernel,
        out_shape=jax.ShapeDtypeStruct((BS, PADW), jnp.float32),   # lane-dense output slab
        in_specs=[vmem_spec] * len(operands),
        out_specs=vmem_spec,
    )(*operands)

    # pooler/classifier were evaluated for every token row inside the kernel
    # (negligible at this size); keep each example's [CLS] row and the real class columns.
    return logits_all.reshape(B, S, PADW)[:, 0, :NUM_CLASSES]


if __name__ == "__main__":
    key = jax.random.PRNGKey(0)
    pkey, dkey = jax.random.split(key)
    params = init_params(pkey)
    kparams = pack_params(params)

    input_ids = jax.random.randint(dkey, (BATCH, SEQ), 0, VOCAB, dtype=jnp.int32)
    attention_mask = jnp.ones((BATCH, SEQ), jnp.int32)
    attention_mask = attention_mask.at[1, SEQ - 2:].set(0)  # pad tail of 2nd example

    logits = bert_classifier_forward(input_ids, attention_mask, kparams)
    jax.block_until_ready(logits)
    assert logits.shape == (BATCH, NUM_CLASSES) and logits.dtype == jnp.float32
    print("KERNEL_OK")
</pallas_src>

<mosaic_0001>
module attributes {stable_mosaic.version = 11 : i64} {
  func.func @bert_fused_kernel(%arg0: memref<16x32xf32, #tpu.memory_space<vmem>>, %arg1: memref<16x16xf32, #tpu.memory_space<vmem>>, %arg2: memref<20x128xf32, #tpu.memory_space<vmem>>, %arg3: memref<2x160x96xf32, #tpu.memory_space<vmem>>, %arg4: memref<32x160xf32, #tpu.memory_space<vmem>>, %arg5: memref<16x128xf32, #tpu.memory_space<vmem>>) attributes {dimension_semantics = [], scalar_prefetch = 0 : i64, scratch_operands = 0 : i64, tpu.core_type = #tpu.core_type<tc>} {
    %c0 = arith.constant 0 : index
    %c0_0 = arith.constant 0 : index
    %0 = vector.load %arg2[%c0, %c0_0] : memref<20x128xf32, #tpu.memory_space<vmem>>, vector<20x128xf32>
    %c0_1 = arith.constant 0 : index
    %c0_2 = arith.constant 0 : index
    %1 = vector.load %arg1[%c0_1, %c0_2] : memref<16x16xf32, #tpu.memory_space<vmem>>, vector<16x16xf32>
    %c0_3 = arith.constant 0 : index
    %c0_4 = arith.constant 0 : index
    %2 = vector.load %arg0[%c0_3, %c0_4] : memref<16x32xf32, #tpu.memory_space<vmem>>, vector<16x32xf32>
    %3 = vector.extract_strided_slice %0 {offsets = [0, 0], sizes = [1, 32], strides = [1, 1]} : vector<20x128xf32> to vector<1x32xf32>
    %4 = vector.extract_strided_slice %0 {offsets = [1, 0], sizes = [1, 32], strides = [1, 1]} : vector<20x128xf32> to vector<1x32xf32>
    %cst = arith.constant dense<0.000000e+00> : vector<16xf32>
    %5 = vector.multi_reduction <add>, %2, %cst [1] : vector<16x32xf32> to vector<16xf32>
    %6 = vector.shape_cast %5 : vector<16xf32> to vector<16x1xf32>
    %cst_5 = arith.constant 3.200000e+01 : f32
    %7 = vector.broadcast %cst_5 : f32 to vector<16x1xf32>
    %8 = arith.divf %6, %7 : vector<16x1xf32>
    %9 = vector.broadcast %8 : vector<16x1xf32> to vector<16x32xf32>
    %10 = arith.subf %2, %9 : vector<16x32xf32>
    %11 = vector.broadcast %8 : vector<16x1xf32> to vector<16x32xf32>
    %12 = arith.subf %2, %11 : vector<16x32xf32>
    %13 = arith.mulf %10, %12 : vector<16x32xf32>
    %cst_6 = arith.constant dense<0.000000e+00> : vector<16xf32>
    %14 = vector.multi_reduction <add>, %13, %cst_6 [1] : vector<16x32xf32> to vector<16xf32>
    %15 = vector.shape_cast %14 : vector<16xf32> to vector<16x1xf32>
    %cst_7 = arith.constant 3.200000e+01 : f32
    %16 = vector.broadcast %cst_7 : f32 to vector<16x1xf32>
    %17 = arith.divf %15, %16 : vector<16x1xf32>
    %18 = vector.broadcast %8 : vector<16x1xf32> to vector<16x32xf32>
    %19 = arith.subf %2, %18 : vector<16x32xf32>
    %cst_8 = arith.constant 9.99999996E-13 : f32
    %20 = vector.broadcast %cst_8 : f32 to vector<16x1xf32>
    %21 = arith.addf %17, %20 : vector<16x1xf32>
    %22 = math.rsqrt %21 : vector<16x1xf32>
    %23 = vector.broadcast %22 : vector<16x1xf32> to vector<16x32xf32>
    %24 = arith.mulf %19, %23 : vector<16x32xf32>
    %25 = vector.broadcast %3 : vector<1x32xf32> to vector<16x32xf32>
    %26 = arith.mulf %24, %25 : vector<16x32xf32>
    %27 = vector.broadcast %4 : vector<1x32xf32> to vector<16x32xf32>
    %28 = arith.addf %26, %27 : vector<16x32xf32>
    %29 = vector.extract_strided_slice %0 {offsets = [2, 0], sizes = [1, 96], strides = [1, 1]} : vector<20x128xf32> to vector<1x96xf32>
    %30 = vector.extract_strided_slice %0 {offsets = [3, 0], sizes = [1, 32], strides = [1, 1]} : vector<20x128xf32> to vector<1x32xf32>
    %31 = vector.extract_strided_slice %0 {offsets = [4, 0], sizes = [1, 32], strides = [1, 1]} : vector<20x128xf32> to vector<1x32xf32>
    %32 = vector.extract_strided_slice %0 {offsets = [5, 0], sizes = [1, 32], strides = [1, 1]} : vector<20x128xf32> to vector<1x32xf32>
    %33 = vector.extract_strided_slice %0 {offsets = [6, 0], sizes = [1, 64], strides = [1, 1]} : vector<20x128xf32> to vector<1x64xf32>
    %34 = vector.extract_strided_slice %0 {offsets = [7, 0], sizes = [1, 32], strides = [1, 1]} : vector<20x128xf32> to vector<1x32xf32>
    %35 = vector.extract_strided_slice %0 {offsets = [8, 0], sizes = [1, 32], strides = [1, 1]} : vector<20x128xf32> to vector<1x32xf32>
    %36 = vector.extract_strided_slice %0 {offsets = [9, 0], sizes = [1, 32], strides = [1, 1]} : vector<20x128xf32> to vector<1x32xf32>
    %c0_9 = arith.constant 0 : index
    %c0_10 = arith.constant 0 : index
    %c0_11 = arith.constant 0 : index
    %37 = vector.load %arg3[%c0_9, %c0_10, %c0_11] : memref<2x160x96xf32, #tpu.memory_space<vmem>>, vector<1x160x96xf32>
    %38 = vector.shape_cast %37 : vector<1x160x96xf32> to vector<160x96xf32>
    %39 = vector.extract_strided_slice %38 {offsets = [0, 0], sizes = [32, 96], strides = [1, 1]} : vector<160x96xf32> to vector<32x96xf32>
    %40 = vector.extract_strided_slice %38 {offsets = [32, 0], sizes = [32, 64], strides = [1, 1]} : vector<160x96xf32> to vector<32x64xf32>
    %41 = vector.extract_strided_slice %38 {offsets = [64, 0], sizes = [64, 32], strides = [1, 1]} : vector<160x96xf32> to vector<64x32xf32>
    %42 = vector.extract_strided_slice %38 {offsets = [128, 0], sizes = [32, 32], strides = [1, 1]} : vector<160x96xf32> to vector<32x32xf32>
    %cst_12 = arith.constant dense<0.000000e+00> : vector<16x96xf32>
    %43 = tpu.matmul %28, %39, %cst_12 {dimension_numbers = #tpu.dot_dimension_numbers<[1], [0], [0], [1], [0, 0, 1, 1], [], []>} : vector<16x32xf32>, vector<32x96xf32>, vector<16x96xf32> -> vector<16x96xf32>
    %44 = vector.broadcast %29 : vector<1x96xf32> to vector<16x96xf32>
    %45 = arith.addf %43, %44 : vector<16x96xf32>
    %cst_13 = arith.constant 0.000000e+00 : f32
    %46 = vector.broadcast %cst_13 : f32 to vector<16x32xf32>
    %47 = vector.extract_strided_slice %45 {offsets = [0, 0], sizes = [16, 16], strides = [1, 1]} : vector<16x96xf32> to vector<16x16xf32>
    %48 = vector.extract_strided_slice %45 {offsets = [0, 32], sizes = [16, 16], strides = [1, 1]} : vector<16x96xf32> to vector<16x16xf32>
    %49 = vector.extract_strided_slice %45 {offsets = [0, 64], sizes = [16, 16], strides = [1, 1]} : vector<16x96xf32> to vector<16x16xf32>
    %50 = tpu.transpose %48, [1, 0] : vector<16x16xf32> -> vector<16x16xf32>
    %cst_14 = arith.constant dense<0.000000e+00> : vector<16x16xf32>
    %51 = tpu.matmul %47, %50, %cst_14 {dimension_numbers = #tpu.dot_dimension_numbers<[1], [0], [0], [1], [0, 0, 1, 1], [], []>} : vector<16x16xf32>, vector<16x16xf32>, vector<16x16xf32> -> vector<16x16xf32>
    %52 = arith.addf %51, %1 : vector<16x16xf32>
    %cst_15 = arith.constant dense<0xFF800000> : vector<16xf32>
    %53 = vector.multi_reduction <maximumf>, %52, %cst_15 [1] : vector<16x16xf32> to vector<16xf32>
    %54 = vector.shape_cast %53 : vector<16xf32> to vector<16x1xf32>
    %55 = vector.broadcast %54 : vector<16x1xf32> to vector<16x16xf32>
    %56 = arith.subf %52, %55 : vector<16x16xf32>
    %57 = math.exp %56 : vector<16x16xf32>
    %cst_16 = arith.constant dense<0.000000e+00> : vector<16xf32>
    %58 = vector.multi_reduction <add>, %57, %cst_16 [1] : vector<16x16xf32> to vector<16xf32>
    %59 = vector.shape_cast %58 : vector<16xf32> to vector<16x1xf32>
    %60 = tpu.reciprocal %59 {approx = true} : vector<16x1xf32> -> vector<16x1xf32>
    %61 = vector.broadcast %60 : vector<16x1xf32> to vector<16x16xf32>
    %62 = arith.mulf %57, %61 : vector<16x16xf32>
    %cst_17 = arith.constant dense<0.000000e+00> : vector<16x16xf32>
    %63 = tpu.matmul %62, %49, %cst_17 {dimension_numbers = #tpu.dot_dimension_numbers<[1], [0], [0], [1], [0, 0, 1, 1], [], []>} : vector<16x16xf32>, vector<16x16xf32>, vector<16x16xf32> -> vector<16x16xf32>
    %64 = vector.extract_strided_slice %42 {offsets = [0, 0], sizes = [16, 32], strides = [1, 1]} : vector<32x32xf32> to vector<16x32xf32>
    %cst_18 = arith.constant dense<0.000000e+00> : vector<16x32xf32>
    %65 = tpu.matmul %63, %64, %cst_18 {dimension_numbers = #tpu.dot_dimension_numbers<[1], [0], [0], [1], [0, 0, 1, 1], [], []>} : vector<16x16xf32>, vector<16x32xf32>, vector<16x32xf32> -> vector<16x32xf32>
    %66 = arith.addf %46, %65 : vector<16x32xf32>
    %67 = vector.extract_strided_slice %45 {offsets = [0, 16], sizes = [16, 16], strides = [1, 1]} : vector<16x96xf32> to vector<16x16xf32>
    %68 = vector.extract_strided_slice %45 {offsets = [0, 48], sizes = [16, 16], strides = [1, 1]} : vector<16x96xf32> to vector<16x16xf32>
    %69 = vector.extract_strided_slice %45 {offsets = [0, 80], sizes = [16, 16], strides = [1, 1]} : vector<16x96xf32> to vector<16x16xf32>
    %70 = tpu.transpose %68, [1, 0] : vector<16x16xf32> -> vector<16x16xf32>
    %cst_19 = arith.constant dense<0.000000e+00> : vector<16x16xf32>
    %71 = tpu.matmul %67, %70, %cst_19 {dimension_numbers = #tpu.dot_dimension_numbers<[1], [0], [0], [1], [0, 0, 1, 1], [], []>} : vector<16x16xf32>, vector<16x16xf32>, vector<16x16xf32> -> vector<16x16xf32>
    %72 = arith.addf %71, %1 : vector<16x16xf32>
    %cst_20 = arith.constant dense<0xFF800000> : vector<16xf32>
    %73 = vector.multi_reduction <maximumf>, %72, %cst_20 [1] : vector<16x16xf32> to vector<16xf32>
    %74 = vector.shape_cast %73 : vector<16xf32> to vector<16x1xf32>
    %75 = vector.broadcast %74 : vector<16x1xf32> to vector<16x16xf32>
    %76 = arith.subf %72, %75 : vector<16x16xf32>
    %77 = math.exp %76 : vector<16x16xf32>
    %cst_21 = arith.constant dense<0.000000e+00> : vector<16xf32>
    %78 = vector.multi_reduction <add>, %77, %cst_21 [1] : vector<16x16xf32> to vector<16xf32>
    %79 = vector.shape_cast %78 : vector<16xf32> to vector<16x1xf32>
    %80 = tpu.reciprocal %79 {approx = true} : vector<16x1xf32> -> vector<16x1xf32>
    %81 = vector.broadcast %80 : vector<16x1xf32> to vector<16x16xf32>
    %82 = arith.mulf %77, %81 : vector<16x16xf32>
    %cst_22 = arith.constant dense<0.000000e+00> : vector<16x16xf32>
    %83 = tpu.matmul %82, %69, %cst_22 {dimension_numbers = #tpu.dot_dimension_numbers<[1], [0], [0], [1], [0, 0, 1, 1], [], []>} : vector<16x16xf32>, vector<16x16xf32>, vector<16x16xf32> -> vector<16x16xf32>
    %84 = vector.extract_strided_slice %42 {offsets = [16, 0], sizes = [16, 32], strides = [1, 1]} : vector<32x32xf32> to vector<16x32xf32>
    %cst_23 = arith.constant dense<0.000000e+00> : vector<16x32xf32>
    %85 = tpu.matmul %83, %84, %cst_23 {dimension_numbers = #tpu.dot_dimension_numbers<[1], [0], [0], [1], [0, 0, 1, 1], [], []>} : vector<16x16xf32>, vector<16x32xf32>, vector<16x32xf32> -> vector<16x32xf32>
    %86 = arith.addf %66, %85 : vector<16x32xf32>
    %87 = arith.addf %28, %86 : vector<16x32xf32>
    %88 = vector.broadcast %30 : vector<1x32xf32> to vector<16x32xf32>
    %89 = arith.addf %87, %88 : vector<16x32xf32>
    %cst_24 = arith.constant dense<0.000000e+00> : vector<16xf32>
    %90 = vector.multi_reduction <add>, %89, %cst_24 [1] : vector<16x32xf32> to vector<16xf32>
    %91 = vector.shape_cast %90 : vector<16xf32> to vector<16x1xf32>
    %cst_25 = arith.constant 3.200000e+01 : f32
    %92 = vector.broadcast %cst_25 : f32 to vector<16x1xf32>
    %93 = arith.divf %91, %92 : vector<16x1xf32>
    %94 = vector.broadcast %93 : vector<16x1xf32> to vector<16x32xf32>
    %95 = arith.subf %89, %94 : vector<16x32xf32>
    %96 = vector.broadcast %93 : vector<16x1xf32> to vector<16x32xf32>
    %97 = arith.subf %89, %96 : vector<16x32xf32>
    %98 = arith.mulf %95, %97 : vector<16x32xf32>
    %cst_26 = arith.constant dense<0.000000e+00> : vector<16xf32>
    %99 = vector.multi_reduction <add>, %98, %cst_26 [1] : vector<16x32xf32> to vector<16xf32>
    %100 = vector.shape_cast %99 : vector<16xf32> to vector<16x1xf32>
    %cst_27 = arith.constant 3.200000e+01 : f32
    %101 = vector.broadcast %cst_27 : f32 to vector<16x1xf32>
    %102 = arith.divf %100, %101 : vector<16x1xf32>
    %103 = vector.broadcast %93 : vector<16x1xf32> to vector<16x32xf32>
    %104 = arith.subf %89, %103 : vector<16x32xf32>
    %cst_28 = arith.constant 9.99999996E-13 : f32
    %105 = vector.broadcast %cst_28 : f32 to vector<16x1xf32>
    %106 = arith.addf %102, %105 : vector<16x1xf32>
    %107 = math.rsqrt %106 : vector<16x1xf32>
    %108 = vector.broadcast %107 : vector<16x1xf32> to vector<16x32xf32>
    %109 = arith.mulf %104, %108 : vector<16x32xf32>
    %110 = vector.broadcast %31 : vector<1x32xf32> to vector<16x32xf32>
    %111 = arith.mulf %109, %110 : vector<16x32xf32>
    %112 = vector.broadcast %32 : vector<1x32xf32> to vector<16x32xf32>
    %113 = arith.addf %111, %112 : vector<16x32xf32>
    %cst_29 = arith.constant dense<0.000000e+00> : vector<16x64xf32>
    %114 = tpu.matmul %113, %40, %cst_29 {dimension_numbers = #tpu.dot_dimension_numbers<[1], [0], [0], [1], [0, 0, 1, 1], [], []>} : vector<16x32xf32>, vector<32x64xf32>, vector<16x64xf32> -> vector<16x64xf32>
    %115 = vector.broadcast %33 : vector<1x64xf32> to vector<16x64xf32>
    %116 = arith.addf %114, %115 : vector<16x64xf32>
    %cst_30 = arith.constant 5.000000e-01 : f32
    %117 = vector.broadcast %cst_30 : f32 to vector<16x64xf32>
    %118 = arith.mulf %117, %116 : vector<16x64xf32>
    %cst_31 = arith.constant 0.707106769 : f32
    %119 = vector.broadcast %cst_31 : f32 to vector<16x64xf32>
    %120 = arith.mulf %116, %119 : vector<16x64xf32>
    %121 = math.erf %120 : vector<16x64xf32>
    %cst_32 = arith.constant 1.000000e+00 : f32
    %122 = vector.broadcast %cst_32 : f32 to vector<16x64xf32>
    %123 = arith.addf %122, %121 : vector<16x64xf32>
    %124 = arith.mulf %118, %123 : vector<16x64xf32>
    %cst_33 = arith.constant dense<0.000000e+00> : vector<16x32xf32>
    %125 = tpu.matmul %124, %41, %cst_33 {dimension_numbers = #tpu.dot_dimension_numbers<[1], [0], [0], [1], [0, 0, 1, 1], [], []>} : vector<16x64xf32>, vector<64x32xf32>, vector<16x32xf32> -> vector<16x32xf32>
    %126 = vector.broadcast %34 : vector<1x32xf32> to vector<16x32xf32>
    %127 = arith.addf %125, %126 : vector<16x32xf32>
    %128 = arith.addf %113, %127 : vector<16x32xf32>
    %cst_34 = arith.constant dense<0.000000e+00> : vector<16xf32>
    %129 = vector.multi_reduction <add>, %128, %cst_34 [1] : vector<16x32xf32> to vector<16xf32>
    %130 = vector.shape_cast %129 : vector<16xf32> to vector<16x1xf32>
    %cst_35 = arith.constant 3.200000e+01 : f32
    %131 = vector.broadcast %cst_35 : f32 to vector<16x1xf32>
    %132 = arith.divf %130, %131 : vector<16x1xf32>
    %133 = vector.broadcast %132 : vector<16x1xf32> to vector<16x32xf32>
    %134 = arith.subf %128, %133 : vector<16x32xf32>
    %135 = vector.broadcast %132 : vector<16x1xf32> to vector<16x32xf32>
    %136 = arith.subf %128, %135 : vector<16x32xf32>
    %137 = arith.mulf %134, %136 : vector<16x32xf32>
    %cst_36 = arith.constant dense<0.000000e+00> : vector<16xf32>
    %138 = vector.multi_reduction <add>, %137, %cst_36 [1] : vector<16x32xf32> to vector<16xf32>
    %139 = vector.shape_cast %138 : vector<16xf32> to vector<16x1xf32>
    %cst_37 = arith.constant 3.200000e+01 : f32
    %140 = vector.broadcast %cst_37 : f32 to vector<16x1xf32>
    %141 = arith.divf %139, %140 : vector<16x1xf32>
    %142 = vector.broadcast %132 : vector<16x1xf32> to vector<16x32xf32>
    %143 = arith.subf %128, %142 : vector<16x32xf32>
    %cst_38 = arith.constant 9.99999996E-13 : f32
    %144 = vector.broadcast %cst_38 : f32 to vector<16x1xf32>
    %145 = arith.addf %141, %144 : vector<16x1xf32>
    %146 = math.rsqrt %145 : vector<16x1xf32>
    %147 = vector.broadcast %146 : vector<16x1xf32> to vector<16x32xf32>
    %148 = arith.mulf %143, %147 : vector<16x32xf32>
    %149 = vector.broadcast %35 : vector<1x32xf32> to vector<16x32xf32>
    %150 = arith.mulf %148, %149 : vector<16x32xf32>
    %151 = vector.broadcast %36 : vector<1x32xf32> to vector<16x32xf32>
    %152 = arith.addf %150, %151 : vector<16x32xf32>
    %153 = vector.extract_strided_slice %0 {offsets = [10, 0], sizes = [1, 96], strides = [1, 1]} : vector<20x128xf32> to vector<1x96xf32>
    %154 = vector.extract_strided_slice %0 {offsets = [11, 0], sizes = [1, 32], strides = [1, 1]} : vector<20x128xf32> to vector<1x32xf32>
    %155 = vector.extract_strided_slice %0 {offsets = [12, 0], sizes = [1, 32], strides = [1, 1]} : vector<20x128xf32> to vector<1x32xf32>
    %156 = vector.extract_strided_slice %0 {offsets = [13, 0], sizes = [1, 32], strides = [1, 1]} : vector<20x128xf32> to vector<1x32xf32>
    %157 = vector.extract_strided_slice %0 {offsets = [14, 0], sizes = [1, 64], strides = [1, 1]} : vector<20x128xf32> to vector<1x64xf32>
    %158 = vector.extract_strided_slice %0 {offsets = [15, 0], sizes = [1, 32], strides = [1, 1]} : vector<20x128xf32> to vector<1x32xf32>
    %159 = vector.extract_strided_slice %0 {offsets = [16, 0], sizes = [1, 32], strides = [1, 1]} : vector<20x128xf32> to vector<1x32xf32>
    %160 = vector.extract_strided_slice %0 {offsets = [17, 0], sizes = [1, 32], strides = [1, 1]} : vector<20x128xf32> to vector<1x32xf32>
    %c1 = arith.constant 1 : index
    %c0_39 = arith.constant 0 : index
    %c0_40 = arith.constant 0 : index
    %161 = vector.load %arg3[%c1, %c0_39, %c0_40] : memref<2x160x96xf32, #tpu.memory_space<vmem>>, vector<1x160x96xf32>
    %162 = vector.shape_cast %161 : vector<1x160x96xf32> to vector<160x96xf32>
    %163 = vector.extract_strided_slice %162 {offsets = [0, 0], sizes = [32, 96], strides = [1, 1]} : vector<160x96xf32> to vector<32x96xf32>
    %164 = vector.extract_strided_slice %162 {offsets = [32, 0], sizes = [32, 64], strides = [1, 1]} : vector<160x96xf32> to vector<32x64xf32>
    %165 = vector.extract_strided_slice %162 {offsets = [64, 0], sizes = [64, 32], strides = [1, 1]} : vector<160x96xf32> to vector<64x32xf32>
    %166 = vector.extract_strided_slice %162 {offsets = [128, 0], sizes = [32, 32], strides = [1, 1]} : vector<160x96xf32> to vector<32x32xf32>
    %cst_41 = arith.constant dense<0.000000e+00> : vector<16x96xf32>
    %167 = tpu.matmul %152, %163, %cst_41 {dimension_numbers = #tpu.dot_dimension_numbers<[1], [0], [0], [1], [0, 0, 1, 1], [], []>} : vector<16x32xf32>, vector<32x96xf32>, vector<16x96xf32> -> vector<16x96xf32>
    %168 = vector.broadcast %153 : vector<1x96xf32> to vector<16x96xf32>
    %169 = arith.addf %167, %168 : vector<16x96xf32>
    %cst_42 = arith.constant 0.000000e+00 : f32
    %170 = vector.broadcast %cst_42 : f32 to vector<16x32xf32>
    %171 = vector.extract_strided_slice %169 {offsets = [0, 0], sizes = [16, 16], strides = [1, 1]} : vector<16x96xf32> to vector<16x16xf32>
    %172 = vector.extract_strided_slice %169 {offsets = [0, 32], sizes = [16, 16], strides = [1, 1]} : vector<16x96xf32> to vector<16x16xf32>
    %173 = vector.extract_strided_slice %169 {offsets = [0, 64], sizes = [16, 16], strides = [1, 1]} : vector<16x96xf32> to vector<16x16xf32>
    %174 = tpu.transpose %172, [1, 0] : vector<16x16xf32> -> vector<16x16xf32>
    %cst_43 = arith.constant dense<0.000000e+00> : vector<16x16xf32>
    %175 = tpu.matmul %171, %174, %cst_43 {dimension_numbers = #tpu.dot_dimension_numbers<[1], [0], [0], [1], [0, 0, 1, 1], [], []>} : vector<16x16xf32>, vector<16x16xf32>, vector<16x16xf32> -> vector<16x16xf32>
    %176 = arith.addf %175, %1 : vector<16x16xf32>
    %cst_44 = arith.constant dense<0xFF800000> : vector<16xf32>
    %177 = vector.multi_reduction <maximumf>, %176, %cst_44 [1] : vector<16x16xf32> to vector<16xf32>
    %178 = vector.shape_cast %177 : vector<16xf32> to vector<16x1xf32>
    %179 = vector.broadcast %178 : vector<16x1xf32> to vector<16x16xf32>
    %180 = arith.subf %176, %179 : vector<16x16xf32>
    %181 = math.exp %180 : vector<16x16xf32>
    %cst_45 = arith.constant dense<0.000000e+00> : vector<16xf32>
    %182 = vector.multi_reduction <add>, %181, %cst_45 [1] : vector<16x16xf32> to vector<16xf32>
    %183 = vector.shape_cast %182 : vector<16xf32> to vector<16x1xf32>
    %184 = tpu.reciprocal %183 {approx = true} : vector<16x1xf32> -> vector<16x1xf32>
    %185 = vector.broadcast %184 : vector<16x1xf32> to vector<16x16xf32>
    %186 = arith.mulf %181, %185 : vector<16x16xf32>
    %cst_46 = arith.constant dense<0.000000e+00> : vector<16x16xf32>
    %187 = tpu.matmul %186, %173, %cst_46 {dimension_numbers = #tpu.dot_dimension_numbers<[1], [0], [0], [1], [0, 0, 1, 1], [], []>} : vector<16x16xf32>, vector<16x16xf32>, vector<16x16xf32> -> vector<16x16xf32>
    %188 = vector.extract_strided_slice %166 {offsets = [0, 0], sizes = [16, 32], strides = [1, 1]} : vector<32x32xf32> to vector<16x32xf32>
    %cst_47 = arith.constant dense<0.000000e+00> : vector<16x32xf32>
    %189 = tpu.matmul %187, %188, %cst_47 {dimension_numbers = #tpu.dot_dimension_numbers<[1], [0], [0], [1], [0, 0, 1, 1], [], []>} : vector<16x16xf32>, vector<16x32xf32>, vector<16x32xf32> -> vector<16x32xf32>
    %190 = arith.addf %170, %189 : vector<16x32xf32>
    %191 = vector.extract_strided_slice %169 {offsets = [0, 16], sizes = [16, 16], strides = [1, 1]} : vector<16x96xf32> to vector<16x16xf32>
    %192 = vector.extract_strided_slice %169 {offsets = [0, 48], sizes = [16, 16], strides = [1, 1]} : vector<16x96xf32> to vector<16x16xf32>
    %193 = vector.extract_strided_slice %169 {offsets = [0, 80], sizes = [16, 16], strides = [1, 1]} : vector<16x96xf32> to vector<16x16xf32>
    %194 = tpu.transpose %192, [1, 0] : vector<16x16xf32> -> vector<16x16xf32>
    %cst_48 = arith.constant dense<0.000000e+00> : vector<16x16xf32>
    %195 = tpu.matmul %191, %194, %cst_48 {dimension_numbers = #tpu.dot_dimension_numbers<[1], [0], [0], [1], [0, 0, 1, 1], [], []>} : vector<16x16xf32>, vector<16x16xf32>, vector<16x16xf32> -> vector<16x16xf32>
    %196 = arith.addf %195, %1 : vector<16x16xf32>
    %cst_49 = arith.constant dense<0xFF800000> : vector<16xf32>
    %197 = vector.multi_reduction <maximumf>, %196, %cst_49 [1] : vector<16x16xf32> to vector<16xf32>
    %198 = vector.shape_cast %197 : vector<16xf32> to vector<16x1xf32>
    %199 = vector.broadcast %198 : vector<16x1xf32> to vector<16x16xf32>
    %200 = arith.subf %196, %199 : vector<16x16xf32>
    %201 = math.exp %200 : vector<16x16xf32>
    %cst_50 = arith.constant dense<0.000000e+00> : vector<16xf32>
    %202 = vector.multi_reduction <add>, %201, %cst_50 [1] : vector<16x16xf32> to vector<16xf32>
    %203 = vector.shape_cast %202 : vector<16xf32> to vector<16x1xf32>
    %204 = tpu.reciprocal %203 {approx = true} : vector<16x1xf32> -> vector<16x1xf32>
    %205 = vector.broadcast %204 : vector<16x1xf32> to vector<16x16xf32>
    %206 = arith.mulf %201, %205 : vector<16x16xf32>
    %cst_51 = arith.constant dense<0.000000e+00> : vector<16x16xf32>
    %207 = tpu.matmul %206, %193, %cst_51 {dimension_numbers = #tpu.dot_dimension_numbers<[1], [0], [0], [1], [0, 0, 1, 1], [], []>} : vector<16x16xf32>, vector<16x16xf32>, vector<16x16xf32> -> vector<16x16xf32>
    %208 = vector.extract_strided_slice %166 {offsets = [16, 0], sizes = [16, 32], strides = [1, 1]} : vector<32x32xf32> to vector<16x32xf32>
    %cst_52 = arith.constant dense<0.000000e+00> : vector<16x32xf32>
    %209 = tpu.matmul %207, %208, %cst_52 {dimension_numbers = #tpu.dot_dimension_numbers<[1], [0], [0], [1], [0, 0, 1, 1], [], []>} : vector<16x16xf32>, vector<16x32xf32>, vector<16x32xf32> -> vector<16x32xf32>
    %210 = arith.addf %190, %209 : vector<16x32xf32>
    %211 = arith.addf %152, %210 : vector<16x32xf32>
    %212 = vector.broadcast %154 : vector<1x32xf32> to vector<16x32xf32>
    %213 = arith.addf %211, %212 : vector<16x32xf32>
    %cst_53 = arith.constant dense<0.000000e+00> : vector<16xf32>
    %214 = vector.multi_reduction <add>, %213, %cst_53 [1] : vector<16x32xf32> to vector<16xf32>
    %215 = vector.shape_cast %214 : vector<16xf32> to vector<16x1xf32>
    %cst_54 = arith.constant 3.200000e+01 : f32
    %216 = vector.broadcast %cst_54 : f32 to vector<16x1xf32>
    %217 = arith.divf %215, %216 : vector<16x1xf32>
    %218 = vector.broadcast %217 : vector<16x1xf32> to vector<16x32xf32>
    %219 = arith.subf %213, %218 : vector<16x32xf32>
    %220 = vector.broadcast %217 : vector<16x1xf32> to vector<16x32xf32>
    %221 = arith.subf %213, %220 : vector<16x32xf32>
    %222 = arith.mulf %219, %221 : vector<16x32xf32>
    %cst_55 = arith.constant dense<0.000000e+00> : vector<16xf32>
    %223 = vector.multi_reduction <add>, %222, %cst_55 [1] : vector<16x32xf32> to vector<16xf32>
    %224 = vector.shape_cast %223 : vector<16xf32> to vector<16x1xf32>
    %cst_56 = arith.constant 3.200000e+01 : f32
    %225 = vector.broadcast %cst_56 : f32 to vector<16x1xf32>
    %226 = arith.divf %224, %225 : vector<16x1xf32>
    %227 = vector.broadcast %217 : vector<16x1xf32> to vector<16x32xf32>
    %228 = arith.subf %213, %227 : vector<16x32xf32>
    %cst_57 = arith.constant 9.99999996E-13 : f32
    %229 = vector.broadcast %cst_57 : f32 to vector<16x1xf32>
    %230 = arith.addf %226, %229 : vector<16x1xf32>
    %231 = math.rsqrt %230 : vector<16x1xf32>
    %232 = vector.broadcast %231 : vector<16x1xf32> to vector<16x32xf32>
    %233 = arith.mulf %228, %232 : vector<16x32xf32>
    %234 = vector.broadcast %155 : vector<1x32xf32> to vector<16x32xf32>
    %235 = arith.mulf %233, %234 : vector<16x32xf32>
    %236 = vector.broadcast %156 : vector<1x32xf32> to vector<16x32xf32>
    %237 = arith.addf %235, %236 : vector<16x32xf32>
    %cst_58 = arith.constant dense<0.000000e+00> : vector<16x64xf32>
    %238 = tpu.matmul %237, %164, %cst_58 {dimension_numbers = #tpu.dot_dimension_numbers<[1], [0], [0], [1], [0, 0, 1, 1], [], []>} : vector<16x32xf32>, vector<32x64xf32>, vector<16x64xf32> -> vector<16x64xf32>
    %239 = vector.broadcast %157 : vector<1x64xf32> to vector<16x64xf32>
    %240 = arith.addf %238, %239 : vector<16x64xf32>
    %cst_59 = arith.constant 5.000000e-01 : f32
    %241 = vector.broadcast %cst_59 : f32 to vector<16x64xf32>
    %242 = arith.mulf %241, %240 : vector<16x64xf32>
    %cst_60 = arith.constant 0.707106769 : f32
    %243 = vector.broadcast %cst_60 : f32 to vector<16x64xf32>
    %244 = arith.mulf %240, %243 : vector<16x64xf32>
    %245 = math.erf %244 : vector<16x64xf32>
    %cst_61 = arith.constant 1.000000e+00 : f32
    %246 = vector.broadcast %cst_61 : f32 to vector<16x64xf32>
    %247 = arith.addf %246, %245 : vector<16x64xf32>
    %248 = arith.mulf %242, %247 : vector<16x64xf32>
    %cst_62 = arith.constant dense<0.000000e+00> : vector<16x32xf32>
    %249 = tpu.matmul %248, %165, %cst_62 {dimension_numbers = #tpu.dot_dimension_numbers<[1], [0], [0], [1], [0, 0, 1, 1], [], []>} : vector<16x64xf32>, vector<64x32xf32>, vector<16x32xf32> -> vector<16x32xf32>
    %250 = vector.broadcast %158 : vector<1x32xf32> to vector<16x32xf32>
    %251 = arith.addf %249, %250 : vector<16x32xf32>
    %252 = arith.addf %237, %251 : vector<16x32xf32>
    %cst_63 = arith.constant dense<0.000000e+00> : vector<16xf32>
    %253 = vector.multi_reduction <add>, %252, %cst_63 [1] : vector<16x32xf32> to vector<16xf32>
    %254 = vector.shape_cast %253 : vector<16xf32> to vector<16x1xf32>
    %cst_64 = arith.constant 3.200000e+01 : f32
    %255 = vector.broadcast %cst_64 : f32 to vector<16x1xf32>
    %256 = arith.divf %254, %255 : vector<16x1xf32>
    %257 = vector.broadcast %256 : vector<16x1xf32> to vector<16x32xf32>
    %258 = arith.subf %252, %257 : vector<16x32xf32>
    %259 = vector.broadcast %256 : vector<16x1xf32> to vector<16x32xf32>
    %260 = arith.subf %252, %259 : vector<16x32xf32>
    %261 = arith.mulf %258, %260 : vector<16x32xf32>
    %cst_65 = arith.constant dense<0.000000e+00> : vector<16xf32>
    %262 = vector.multi_reduction <add>, %261, %cst_65 [1] : vector<16x32xf32> to vector<16xf32>
    %263 = vector.shape_cast %262 : vector<16xf32> to vector<16x1xf32>
    %cst_66 = arith.constant 3.200000e+01 : f32
    %264 = vector.broadcast %cst_66 : f32 to vector<16x1xf32>
    %265 = arith.divf %263, %264 : vector<16x1xf32>
    %266 = vector.broadcast %256 : vector<16x1xf32> to vector<16x32xf32>
    %267 = arith.subf %252, %266 : vector<16x32xf32>
    %cst_67 = arith.constant 9.99999996E-13 : f32
    %268 = vector.broadcast %cst_67 : f32 to vector<16x1xf32>
    %269 = arith.addf %265, %268 : vector<16x1xf32>
    %270 = math.rsqrt %269 : vector<16x1xf32>
    %271 = vector.broadcast %270 : vector<16x1xf32> to vector<16x32xf32>
    %272 = arith.mulf %267, %271 : vector<16x32xf32>
    %273 = vector.broadcast %159 : vector<1x32xf32> to vector<16x32xf32>
    %274 = arith.mulf %272, %273 : vector<16x32xf32>
    %275 = vector.broadcast %160 : vector<1x32xf32> to vector<16x32xf32>
    %276 = arith.addf %274, %275 : vector<16x32xf32>
    %277 = vector.extract_strided_slice %0 {offsets = [18, 0], sizes = [1, 32], strides = [1, 1]} : vector<20x128xf32> to vector<1x32xf32>
    %278 = vector.extract_strided_slice %0 {offsets = [19, 0], sizes = [1, 128], strides = [1, 1]} : vector<20x128xf32> to vector<1x128xf32>
    %c0_68 = arith.constant 0 : index
    %c0_69 = arith.constant 0 : index
    %279 = vector.load %arg4[%c0_68, %c0_69] : memref<32x160xf32, #tpu.memory_space<vmem>>, vector<32x160xf32>
    %280 = vector.extract_strided_slice %279 {offsets = [0, 0], sizes = [32, 32], strides = [1, 1]} : vector<32x160xf32> to vector<32x32xf32>
    %281 = vector.extract_strided_slice %279 {offsets = [0, 32], sizes = [32, 128], strides = [1, 1]} : vector<32x160xf32> to vector<32x128xf32>
    %cst_70 = arith.constant dense<0.000000e+00> : vector<16x32xf32>
    %282 = tpu.matmul %276, %280, %cst_70 {dimension_numbers = #tpu.dot_dimension_numbers<[1], [0], [0], [1], [0, 0, 1, 1], [], []>} : vector<16x32xf32>, vector<32x32xf32>, vector<16x32xf32> -> vector<16x32xf32>
    %283 = vector.broadcast %277 : vector<1x32xf32> to vector<16x32xf32>
    %284 = arith.addf %282, %283 : vector<16x32xf32>
    %285 = math.tanh %284 : vector<16x32xf32>
    %cst_71 = arith.constant dense<0.000000e+00> : vector<16x128xf32>
    %286 = tpu.matmul %285, %281, %cst_71 {dimension_numbers = #tpu.dot_dimension_numbers<[1], [0], [0], [1], [0, 0, 1, 1], [], []>} : vector<16x32xf32>, vector<32x128xf32>, vector<16x128xf32> -> vector<16x128xf32>
    %287 = vector.broadcast %278 : vector<1x128xf32> to vector<16x128xf32>
    %288 = arith.addf %286, %287 : vector<16x128xf32>
    %c0_72 = arith.constant 0 : index
    %c0_73 = arith.constant 0 : index
    %289 = vector.load %arg5[%c0_72, %c0_73] : memref<16x128xf32, #tpu.memory_space<vmem>>, vector<16x128xf32>
    tpu.vector_store %arg5[%c0_72, %c0_73], %288 {strides = array<i32>} : memref<16x128xf32, #tpu.memory_space<vmem>>, vector<16x128xf32>,
    return
  }
}

</mosaic_0001>

<bundles_post_ra>
// kernel: bert_classifier_forward.1
= control target key start
LH: loop header
LB: loop body
LE: loop exit
PB: predicated region body
PF: predicated region fallthrough
CT: control target
= control target key end

     0   :  { %10 = vsyncpa [#allocation3], 0  ;;  %s1533_s21 = smov [#allocation2]   ;;  %s1534_s23 = smov 128   ;;  %s1973_s0 = inlined_call_operand.vmem [shape: f32[16,32], index: 0, kind: input, shape index: {}]   ;;  %s1974_s1 = inlined_call_operand.vmem [shape: f32[16,16], index: 1, kind: input, shape index: {}]   ;;  %s1975_s2 = inlined_call_operand.hbm [shape: f32[20,128], index: 2, kind: input, shape index: {}]   ;;  %s1976_s3 = inlined_call_operand.vmem [shape: f32[2,160,96], index: 3, kind: input, shape index: {}]   ;;  %s1977_s4 = inlined_call_operand.vmem [shape: f32[32,160], index: 4, kind: input, shape index: {}]   ;;  %s1978_s5 = inlined_call_operand.vmem [shape: f32[16,128], index: 5, kind: output, shape index: {}]  }
   0x1   :  { %s19_s20 = sshll.u32 %s1975_s2, 4  ;;  %s21_s22 = sshll.u32 %s1533_s21, 4  ;;  %s20_s20 = int_to_ptr.hbm [resolvable:$true] %s19_s20  ;;  %s22_s22 = int_to_ptr.vmem [resolvable:$true] %s21_s22 }
   0x2   :  { %s1535_s24 = smov 8  }
   0x3   :  { %27 = dma.hbm_to_vmem [thread:$0]  %s20_s20, 384, %s22_s22, [#allocation3], %s1534_s23, %s1534_s23, %s1535_s24  }
   0x4   :  { %1531 = dma.done.wait [#allocation3], 384  }
   0x5   :  { %1532 = vsyncadd [#allocation3], 4294966912  ;;  %vm43_vm0 = vcmask 261120   ;;  %v41_v0 = vld [vmem:[%s1973_s0] sm:$0xff]  ;;  %v42_v2 = vld [vmem:[%s1973_s0 + $0x8] sm:$0xff]  ;;  %v1536_v4 = vmov 32.0  }
   0x6   :  { %v44_v1 = vsel %vm43_vm0, %v41_v0, 0.0  ;;  %v47_v3 = vsel %vm43_vm0, %v42_v2, 0.0  ;;  %1441 = vrcp.f32 %v1536_v4  ;;  %v104_v21 = vld [vmem:[%s1976_s3 + $0x18] sm:$0xff]  ;;  %v103_v22 = vld [vmem:[%s1976_s3 + $0x10] sm:$0xff]  ;;  %v102_v23 = vld [vmem:[%s1976_s3 + $0x8] sm:$0xff]  ;;  %s1537_s10 = smov 80  }
   0x7   :  { %45 = vadd.xlane.f32.xlu0 %v44_v1  ;;  %140 = vmatpush.msra.mxu0 %v104_v21  ;;  %v101_v24 = vld [vmem:[%s1976_s3] sm:$0xff]  ;;  %s1538_s11 = smov 96   ;;  %s1539_s12 = smov 112   ;;  %vm157_vm8 = vcmask 130048  }
   0x8   :  { %v1603_v36 = vld [vmem:[#allocation2] sm:$0xff]  ;;  %s1541_s17 = smov 48  }
   0x9   :  { %141 = vmatpush.msra.mxu0 %v103_v22  ;;  %v95_v40 = vperm.slane %v1603_v36, 0  ;;  %v98_v44 = vperm.slane %v1603_v36, 1  ;;  %v121_v54 = vperm.slane %v1603_v36, 2  ;;  %v1633_v1 = vld [vmem:[%s1974_s1] sm:$0xff] }
   0xb   :  { %142 = vmatpush.msra.mxu0 %v102_v23 }
   0xc   :  { %v1442_v5 = vpop.eup %1441 }
   0xd   :  { %v51_v6 = vmul.f32 32.0, %v1442_v5  ;;  %vm55_vm1 = vweird.f32 %v1442_v5  ;;  %143 = vmatpush.msra.mxu0 %v101_v24 }
   0xf   :  { %48 = vadd.xlane.f32.xlu0 %v47_v3  ;;  %v52_v7 = vsub.f32 1.0, %v51_v6 }
  0x11   :  { %v53_v8 = vmul.f32 %v1442_v5, %v52_v7 }
  0x13   :  { %v54_v9 = vadd.f32 %v1442_v5, %v53_v8 }
  0x15   :  { %v1583_v10 = vsel %vm55_vm1, %v1442_v5, %v54_v9  ;;  %v1640_v5 = vld [vmem:[%s1974_s1 + $0x8] sm:$0xff]  ;;  %s1540_s1 = smov 64  }
  0x7a   :  { %v46_v11 = vpop.xlane.xlu0 %45 }
  0x7b   :  { %v57_v12 = vmul.f32 %v1583_v10, %v46_v11 }
  0x7d   :  { %v59_v13 = vsub.f32 %v41_v0, %v57_v12 }
  0x7f   :  { %v61_v14 = vmul.f32 %v59_v13, %v59_v13 }
  0x81   :  { %v63_v15 = vsel %vm43_vm0, %v61_v14, 0.0 }
  0x82   :  { %64 = vadd.xlane.f32.xlu1 %v63_v15  ;;  %v49_v16 = vpop.xlane.xlu0 %48 }
  0x83   :  { %v58_v17 = vmul.f32 %v1583_v10, %v49_v16 }
  0x85   :  { %v60_v18 = vsub.f32 %v42_v2, %v58_v17 }
  0x87   :  { %v62_v19 = vmul.f32 %v60_v18, %v60_v18 }
  0x89   :  { %v66_v20 = vsel %vm43_vm0, %v62_v19, 0.0 }
  0x8a   :  { %67 = vadd.xlane.f32.xlu1 %v66_v20 }
  0xf5   :  { %v65_v25 = vpop.xlane.xlu1 %64 }
  0xf6   :  { %v69_v26 = vmul.f32 %v65_v25, %v1583_v10 }
  0xf8   :  { %v71_v27 = vadd.f32 1e-12, %v69_v26 }
  0xfa   :  { %1443 = vrsqrt.f32 %v71_v27  ;;  %vm79_vm3 = vweird.f32 %v71_v27 }
  0xfd   :  { %v68_v28 = vpop.xlane.xlu1 %67 }
  0xfe   :  { %v70_v29 = vmul.f32 %v68_v28, %v1583_v10 }
 0x100   :  { %v1444_v30 = vpop.eup %1443  ;;  %v72_v31 = vadd.f32 1e-12, %v70_v29 }
 0x101   :  { %v74_v32 = vmul.f32 %v1444_v30, %v71_v27  ;;  %vm80_vm2 = vweird.f32 %v1444_v30 }
 0x102   :  { %1445 = vrsqrt.f32 %v72_v31  ;;  %vm81_vm4 = vmor %vm79_vm3, %vm80_vm2  ;;  %vm89_vm6 = vweird.f32 %v72_v31 }
 0x103   :  { %v75_v33 = vmul.f32 %v1444_v30, %v74_v32 }
 0x105   :  { %v76_v34 = vmul.f32 0.5, %v75_v33 }
 0x107   :  { %v77_v35 = vsub.f32 1.5, %v76_v34 }
 0x108   :  { %v1446_v37 = vpop.eup %1445 }
 0x109   :  { %v78_v38 = vmul.f32 %v1444_v30, %v77_v35  ;;  %v84_v39 = vmul.f32 %v1446_v37, %v72_v31  ;;  %vm90_vm5 = vweird.f32 %v1446_v37 }
 0x10a   :  { %vm91_vm7 = vmor %vm89_vm6, %vm90_vm5  ;;  %vm574_vm6 = vcmask 523264  }
 0x10b   :  { %v82_v41 = vsel %vm81_vm4, %v1444_v30, %v78_v38  ;;  %v85_v42 = vmul.f32 %v1446_v37, %v84_v39 }
 0x10c   :  { %v93_v43 = vmul.f32 %v82_v41, %v59_v13 }
 0x10d   :  { %v86_v45 = vmul.f32 0.5, %v85_v42 }
 0x10e   :  { %v96_v46 = vmul.f32 %v95_v40, %v93_v43 }
 0x10f   :  { %v87_v47 = vsub.f32 1.5, %v86_v45  ;;  %v118_v45 = vld [vmem:[%s1976_s3 + $0x88] sm:$0xff] }
 0x110   :  { %v1607_v48 = vadd.f32 %v98_v44, %v96_v46 }
 0x111   :  { %v88_v49 = vmul.f32 %v1446_v37, %v87_v47 }
 0x112   :  { %1320 = vmatmul.msk.f32.vlgmr.msra.gmra.mxu0 %vm43_vm0, %v1607_v48 }
 0x113   :  { %v92_v50 = vsel %vm91_vm7, %v1446_v37, %v88_v49 }
 0x114   :  { %v94_v51 = vmul.f32 %v92_v50, %v60_v18 }
 0x116   :  { %v97_v52 = vmul.f32 %v95_v40, %v94_v51 }
 0x118   :  { %v1611_v53 = vadd.f32 %v98_v44, %v97_v52 }
 0x11a   :  { %1321 = vmatmul.msk.f32.gmra.mxu0 %vm43_vm0, %v1611_v53 }
 0x18f   :  { %v145_v55 = vpop.f32.mrf.mxu0 }
 0x190   :  { %v146_v56 = vadd.f32 %v145_v55, %v121_v54 }
 0x192   :  { %250 = vrot.lane.b32.xlu1 %v146_v56, %s1537_s10 }
 0x197   :  { %v148_v57 = vpop.f32.mrf.mxu0 }
 0x198   :  { %v149_v58 = vadd.f32 %v148_v57, %v121_v54 }
 0x19a   :  { %252 = vrot.lane.b32.xlu0 %v149_v58, %s1537_s10  ;;  %155 = vrot.lane.b32.xlu2 %v149_v58, %s1538_s11  ;;  %v1401_v16 = vpack.i.bf16 %v146_v56, %v149_v58 }
 0x1a2   :  { %153 = vrot.lane.b32.xlu2 %v146_v56, %s1538_s11 }
 0x1aa   :  { %246 = vrot.lane.b32.xlu2 %v146_v56, %s1539_s12 }
 0x1b2   :  { %248 = vrot.lane.b32.xlu2 %v149_v58, %s1539_s12 }
 0x1f4   :  { %v156_v59 = vpop.permute.xlu2 %155 }
 0x1f5   :  { %1322 = vmatpush.xpose.msk.msra.mxu1 %vm157_vm8, %v156_v59  ;;  %v117_v59 = vld [vmem:[%s1976_s3 + $0x80] sm:$0xff] }
 0x1fc   :  { %v154_v60 = vpop.permute.xlu2 %153 }
 0x1fd   :  { %1323 = vmatpush.xpose.msk.msra.mxu1 %vm157_vm8, %v154_v60  ;;  %v120_v60 = vld [vmem:[%s1976_s3 + $0x98] sm:$0xff] }
 0x1fe   :  { %362 = vmatpush.msrb.mxu0 %v120_v60 }
 0x200   :  { %1324 = vmatmul.msk.f32.vlgmr.msra.gmra.mxu1 %vm157_vm8, %v146_v56 }
 0x201   :  { %391 = vmatpush.msrb.mxu1 %v118_v45  ;;  %v449_v45 = vperm.slane %v1603_v36, 4 }
 0x203   :  { %392 = vmatpush.msrb.mxu1 %v117_v59 }
 0x204   :  { %v251_v62 = vpop.permute.xlu1 %250  ;;  %v247_v63 = vpop.permute.xlu2 %246 }
 0x208   :  { %1325 = vmatmul.msk.f32.gmra.mxu1 %vm157_vm8, %v149_v58 }
 0x20c   :  { %v253_v61 = vpop.permute.xlu0 %252  ;;  %v249_v0 = vpop.permute.xlu2 %248 }
 0x20d   :  { %1328 = vmatpush.xpose.msk.msra.mxu3 %vm157_vm8, %v253_v61  ;;  %v119_v61 = vld [vmem:[%s1976_s3 + $0x90] sm:$0xff] }
 0x20e   :  { %363 = vmatpush.msrb.mxu0 %v119_v61  ;;  %v455_v61 = vperm.slane %v1603_v36, 6 }
 0x211   :  { %1329 = vmatpush.xpose.msk.msra.mxu3 %vm157_vm8, %v251_v62 }
 0x214   :  { %1330 = vmatmul.msk.f32.vlgmr.msra.gmra.mxu3 %vm157_vm8, %v247_v63 }
 0x21c   :  { %1331 = vmatmul.msk.f32.gmra.mxu3 %vm157_vm8, %v249_v0 }
 0x27d   :  { %v183_v2 = vpop.f32.mrf.mxu1 }
 0x27e   :  { %v184_v3 = vadd.f32 %v183_v2, %v1633_v1 }
 0x280   :  { %v189_v4 = vsel %vm157_vm8, %v184_v3, -inf }
 0x281   :  { %190 = vmax.xlane.f32.xlu2 %v189_v4 }
 0x285   :  { %v186_v6 = vpop.f32.mrf.mxu1 }
 0x286   :  { %v187_v7 = vadd.f32 %v186_v6, %v1640_v5 }
 0x288   :  { %v192_v8 = vsel %vm157_vm8, %v187_v7, -inf }
 0x289   :  { %193 = vmax.xlane.f32.xlu0 %v192_v8 }
 0x297   :  { %v279_v9 = vpop.f32.mrf.mxu3 }
 0x298   :  { %v280_v11 = vadd.f32 %v279_v9, %v1633_v1 }
 0x29a   :  { %v285_v12 = vsel %vm157_vm8, %v280_v11, -inf }
 0x29b   :  { %286 = vmax.xlane.f32.xlu1 %v285_v12 }
 0x29f   :  { %v282_v13 = vpop.f32.mrf.mxu3 }
 0x2a0   :  { %v283_v14 = vadd.f32 %v282_v13, %v1640_v5 }
 0x2a2   :  { %v288_v15 = vsel %vm157_vm8, %v283_v14, -inf }
 0x2a3   :  { %289 = vmax.xlane.f32.xlu2 %v288_v15 }
 0x2bb   :  { %1402 = vrot.lane.b32.xlu2 %v1401_v16, %s1540_s1 }
 0x2f4   :  { %v191_v17 = vpop.xlane.xlu2 %190 }
 0x2f5   :  { %v195_v18 = vsub.f32 %v184_v3, %v191_v17 }
 0x2f7   :  { %v197_v19 = vmul.f32 1.442695, %v195_v18 }
 0x2f9   :  { %1447 = vpow2.f32 %v197_v19 }
 0x2fc   :  { %v194_v20 = vpop.xlane.xlu0 %193 }
 0x2fd   :  { %v196_v21 = vsub.f32 %v187_v7, %v194_v20  ;;  %v402_v7 = vperm.slane %v1603_v36, 3 }
 0x2ff   :  { %v1448_v22 = vpop.eup %1447  ;;  %v199_v23 = vmul.f32 1.442695, %v196_v21 }
 0x300   :  { %v201_v24 = vsel %vm157_vm8, %v1448_v22, 0.0 }
 0x301   :  { %1449 = vpow2.f32 %v199_v23  ;;  %202 = vadd.xlane.f32.xlu0 %v201_v24 }
 0x307   :  { %v1450_v25 = vpop.eup %1449 }
 0x308   :  { %v204_v26 = vsel %vm157_vm8, %v1450_v25, 0.0 }
 0x309   :  { %205 = vadd.xlane.f32.xlu1 %v204_v26 }
 0x30e   :  { %v287_v27 = vpop.xlane.xlu1 %286 }
 0x30f   :  { %v291_v28 = vsub.f32 %v280_v11, %v287_v27  ;;  %v107_v27 = vld [vmem:[%s1976_s3 + $0x30] sm:$0xff] }
 0x311   :  { %v293_v29 = vmul.f32 1.442695, %v291_v28  ;;  %v106_v28 = vld [vmem:[%s1976_s3 + $0x28] sm:$0xff] }
 0x313   :  { %1451 = vpow2.f32 %v293_v29  ;;  %v105_v29 = vld [vmem:[%s1976_s3 + $0x20] sm:$0xff] }
 0x316   :  { %v290_v30 = vpop.xlane.xlu2 %289 }
 0x317   :  { %v292_v31 = vsub.f32 %v283_v14, %v290_v30 }
 0x319   :  { %v1452_v32 = vpop.eup %1451  ;;  %v295_v33 = vmul.f32 1.442695, %v292_v31 }
 0x31a   :  { %v297_v34 = vsel %vm157_vm8, %v1452_v32, 0.0 }
 0x31b   :  { %1453 = vpow2.f32 %v295_v33  ;;  %298 = vadd.xlane.f32.xlu0 %v297_v34 }
 0x31e   :  { %v1403_v35 = vpop.permute.xlu2 %1402 }
 0x31f   :  { %v1404_v37 = vunpack.i.l.bf16 %v1403_v35  ;;  %v1405_v39 = vunpack.i.h.bf16 %v1403_v35 }
 0x321   :  { %v1454_v38 = vpop.eup %1453  ;;  %237 = vmatpush.msra.mxu2 %v1404_v37 }
 0x322   :  { %1407 = vrot.lane.b32.xlu1 %v1401_v16, %s1541_s17  ;;  %v300_v40 = vsel %vm157_vm8, %v1454_v38, 0.0 }
 0x323   :  { %301 = vadd.xlane.f32.xlu0 %v300_v40  ;;  %238 = vmatpush.msra.mxu2 %v1405_v39 }
 0x374   :  { %v203_v41 = vpop.xlane.xlu0 %202 }
 0x375   :  { %1455 = vrcp.f32 %v203_v41 }
 0x37b   :  { %v1456_v42 = vpop.eup %1455 }
 0x37c   :  { %v206_v43 = vpop.xlane.xlu1 %205  ;;  %v209_v44 = vmul.f32 %v1456_v42, %v1448_v22 }
 0x37d   :  { %1457 = vrcp.f32 %v206_v43 }
 0x37e   :  { %1326 = vmatmul.msk.f32.vlgmr.msra.gmra.mxu2 %vm157_vm8, %v209_v44 }
 0x383   :  { %v1458_v46 = vpop.eup %1457 }
 0x384   :  { %v210_v47 = vmul.f32 %v1458_v46, %v1450_v25 }
 0x386   :  { %1327 = vmatmul.msk.f32.gmra.mxu2 %vm157_vm8, %v210_v47 }
 0x38e   :  { %v299_v49 = vpop.xlane.xlu0 %298 }
 0x38f   :  { %1459 = vrcp.f32 %v299_v49 }
 0x394   :  { %v1408_v50 = vpop.permute.xlu1 %1407 }
 0x395   :  { %v1460_v51 = vpop.eup %1459  ;;  %v1409_v52 = vunpack.i.l.bf16 %v1408_v50  ;;  %v1410_v55 = vunpack.i.h.bf16 %v1408_v50  ;;  %v452_v50 = vperm.slane %v1603_v36, 5 }
 0x396   :  { %v302_v54 = vpop.xlane.xlu0 %301  ;;  %v305_v56 = vmul.f32 %v1460_v51, %v1452_v32 }
 0x397   :  { %1461 = vrcp.f32 %v302_v54  ;;  %333 = vmatpush.msrb.mxu2 %v1409_v52 }
 0x399   :  { %334 = vmatpush.msrb.mxu2 %v1410_v55 }
 0x39a   :  { %1332 = vmatmul.msk.f32.vlgmr.msrb.gmra.mxu2 %vm157_vm8, %v305_v56 }
 0x39d   :  { %v1462_v57 = vpop.eup %1461 }
 0x39e   :  { %v306_v58 = vmul.f32 %v1462_v57, %v1454_v38 }
 0x3a2   :  { %1333 = vmatmul.msk.f32.gmra.mxu2 %vm157_vm8, %v306_v58 }
 0x401   :  { %v240_v62 = vpop.f32.mrf.mxu2 }
 0x402   :  { %1336 = vmatmul.msk.f32.vlgmr.msrb.gmra.mxu1 %vm157_vm8, %v240_v62 }
 0x409   :  { %v243_v63 = vpop.f32.mrf.mxu2 }
 0x40a   :  { %1337 = vmatmul.msk.f32.gmra.mxu1 %vm157_vm8, %v243_v63 }
 0x41d   :  { %v336_v0 = vpop.f32.mrf.mxu2 }
 0x41e   :  { %1334 = vmatmul.msk.f32.vlgmr.msrb.gmra.mxu0 %vm157_vm8, %v336_v0 }
 0x425   :  { %v339_v2 = vpop.f32.mrf.mxu2 }
 0x426   :  { %1335 = vmatmul.msk.f32.gmra.mxu0 %vm157_vm8, %v339_v2 }
 0x47f   :  { %v394_v3 = vpop.f32.mrf.mxu1 }
 0x487   :  { %v397_v12 = vpop.f32.mrf.mxu1 }
 0x49b   :  { %v365_v4 = vpop.f32.mrf.mxu0 }
 0x49c   :  { %v395_v6 = vadd.f32 %v394_v3, %v365_v4 }
 0x49e   :  { %v400_v8 = vadd.f32 %v395_v6, %v1607_v48  ;;  %v116_v6 = vld [vmem:[%s1976_s3 + $0x78] sm:$0xff] }
 0x49f   :  { %589 = vmatpush.msra.mxu2 %v116_v6 }
 0x4a0   :  { %v403_v9 = vadd.f32 %v402_v7, %v400_v8 }
 0x4a2   :  { %v405_v11 = vsel %vm43_vm0, %v403_v9, 0.0 }
 0x4a3   :  { %406 = vadd.xlane.f32.xlu0 %v405_v11  ;;  %v368_v13 = vpop.f32.mrf.mxu0  ;;  %v115_v11 = vld [vmem:[%s1976_s3 + $0x70] sm:$0xff] }
 0x4a4   :  { %v398_v14 = vadd.f32 %v397_v12, %v368_v13  ;;  %590 = vmatpush.msra.mxu2 %v115_v11 }
 0x4a6   :  { %v401_v15 = vadd.f32 %v398_v14, %v1611_v53  ;;  %v108_v53 = vld [vmem:[%s1976_s3 + $0x38] sm:$0xff] }
 0x4a7   :  { %474 = vmatpush.msrb.mxu3 %v108_v53 }
 0x4a8   :  { %v404_v16 = vadd.f32 %v402_v7, %v401_v15  ;;  %v114_v15 = vld [vmem:[%s1976_s3 + $0x68] sm:$0xff] }
 0x4a9   :  { %475 = vmatpush.msrb.mxu3 %v107_v27  ;;  %591 = vmatpush.msra.mxu2 %v114_v15 }
 0x4aa   :  { %v408_v17 = vsel %vm43_vm0, %v404_v16, 0.0 }
 0x4ab   :  { %409 = vadd.xlane.f32.xlu2 %v408_v17  ;;  %476 = vmatpush.msrb.mxu3 %v106_v28 }
 0x4ad   :  { %477 = vmatpush.msrb.mxu3 %v105_v29 }
 0x516   :  { %v407_v18 = vpop.xlane.xlu0 %406 }
 0x517   :  { %v411_v19 = vmul.f32 %v407_v18, %v1583_v10 }
 0x519   :  { %v413_v20 = vsub.f32 %v403_v9, %v411_v19  ;;  %v113_v19 = vld [vmem:[%s1976_s3 + $0x60] sm:$0xff] }
 0x51a   :  { %592 = vmatpush.msra.mxu2 %v113_v19 }
 0x51b   :  { %v415_v21 = vmul.f32 %v413_v20, %v413_v20 }
 0x51d   :  { %v417_v48 = vsel %vm43_vm0, %v415_v21, 0.0 }
 0x51e   :  { %418 = vadd.xlane.f32.xlu0 %v417_v48  ;;  %v410_v22 = vpop.xlane.xlu2 %409 }
 0x51f   :  { %v412_v23 = vmul.f32 %v410_v22, %v1583_v10  ;;  %v112_v22 = vld [vmem:[%s1976_s3 + $0x58] sm:$0xff] }
 0x520   :  { %593 = vmatpush.msra.mxu2 %v112_v22 }
 0x521   :  { %v414_v24 = vsub.f32 %v404_v16, %v412_v23 }
 0x523   :  { %v416_v25 = vmul.f32 %v414_v24, %v414_v24 }
 0x525   :  { %v420_v26 = vsel %vm43_vm0, %v416_v25, 0.0 }
 0x526   :  { %421 = vadd.xlane.f32.xlu1 %v420_v26  ;;  %v111_v26 = vld [vmem:[%s1976_s3 + $0x50] sm:$0xff] }
 0x527   :  { %594 = vmatpush.msra.mxu2 %v111_v26 }
 0x591   :  { %v419_v30 = vpop.xlane.xlu0 %418 }
 0x592   :  { %v423_v31 = vmul.f32 %v419_v30, %v1583_v10  ;;  %v110_v30 = vld [vmem:[%s1976_s3 + $0x48] sm:$0xff] }
 0x593   :  { %595 = vmatpush.msra.mxu2 %v110_v30 }
 0x594   :  { %v425_v32 = vadd.f32 1e-12, %v423_v31 }
 0x596   :  { %1463 = vrsqrt.f32 %v425_v32  ;;  %vm433_vm10 = vweird.f32 %v425_v32 }
 0x599   :  { %v422_v33 = vpop.xlane.xlu1 %421 }
 0x59a   :  { %v424_v34 = vmul.f32 %v422_v33, %v1583_v10 }
 0x59c   :  { %v1464_v35 = vpop.eup %1463  ;;  %v426_v37 = vadd.f32 1e-12, %v424_v34  ;;  %v109_v34 = vld [vmem:[%s1976_s3 + $0x40] sm:$0xff] }
 0x59d   :  { %v428_v38 = vmul.f32 %v1464_v35, %v425_v32  ;;  %vm434_vm9 = vweird.f32 %v1464_v35  ;;  %596 = vmatpush.msra.mxu2 %v109_v34 }
 0x59e   :  { %1465 = vrsqrt.f32 %v426_v37  ;;  %vm435_vm11 = vmor %vm433_vm10, %vm434_vm9  ;;  %vm443_vm13 = vweird.f32 %v426_v37 }
 0x59f   :  { %v429_v39 = vmul.f32 %v1464_v35, %v428_v38 }
 0x5a1   :  { %v430_v40 = vmul.f32 0.5, %v429_v39 }
 0x5a3   :  { %v431_v41 = vsub.f32 1.5, %v430_v40 }
 0x5a4   :  { %v1466_v42 = vpop.eup %1465 }
 0x5a5   :  { %v432_v43 = vmul.f32 %v1464_v35, %v431_v41  ;;  %v438_v44 = vmul.f32 %v1466_v42, %v426_v37  ;;  %vm444_vm12 = vweird.f32 %v1466_v42 }
 0x5a6   :  { %vm445_vm14 = vmor %vm443_vm13, %vm444_vm12 }
 0x5a7   :  { %v436_v46 = vsel %vm435_vm11, %v1464_v35, %v432_v43  ;;  %v439_v47 = vmul.f32 %v1466_v42, %v438_v44 }
 0x5a8   :  { %v447_v49 = vmul.f32 %v436_v46, %v413_v20 }
 0x5a9   :  { %v440_v51 = vmul.f32 0.5, %v439_v47 }
 0x5aa   :  { %v450_v52 = vmul.f32 %v449_v45, %v447_v49 }
 0x5ab   :  { %v441_v54 = vsub.f32 1.5, %v440_v51 }
 0x5ac   :  { %v1699_v55 = vadd.f32 %v452_v50, %v450_v52 }
 0x5ad   :  { %v442_v56 = vmul.f32 %v1466_v42, %v441_v54 }
 0x5ae   :  { %1338 = vmatmul.msk.f32.vlgmr.msrb.gmra.mxu3 %vm43_vm0, %v1699_v55 }
 0x5af   :  { %v446_v57 = vsel %vm445_vm14, %v1466_v42, %v442_v56 }
 0x5b0   :  { %v448_v58 = vmul.f32 %v446_v57, %v414_v24 }
 0x5b2   :  { %v451_v59 = vmul.f32 %v449_v45, %v448_v58 }
 0x5b4   :  { %v1703_v60 = vadd.f32 %v452_v50, %v451_v59 }
 0x5b6   :  { %1339 = vmatmul.msk.f32.gmra.mxu3 %vm43_vm0, %v1703_v60 }
 0x631   :  { %v479_v62 = vpop.f32.mrf.mxu3 }
 0x632   :  { %v1708_v63 = vadd.f32 %v479_v62, %v455_v61 }
 0x634   :  { %v1711_v0 = vmul.f32 0.70710677, %v1708_v63 }
 0x636   :  { %v489_v2 = vmul.f32 %v1711_v0, %v1711_v0 }
 0x638   :  { %v490_v3 = vmin.f32 %v489_v2, 16.0 }
 0x639   :  { %v482_v4 = vpop.f32.mrf.mxu3 }
 0x63a   :  { %v491_v7 = vmul.f32 2.1237322e-06, %v490_v3  ;;  %v502_v8 = vmul.f32 3.8918573e-05, %v490_v3  ;;  %v1718_v9 = vadd.f32 %v482_v4, %v455_v61 }
 0x63c   :  { %v492_v12 = vadd.f32 0.00028619796, %v491_v7  ;;  %v503_v13 = vadd.f32 0.001143296, %v502_v8  ;;  %v1724_v14 = vmul.f32 0.70710677, %v1718_v9 }
 0x63e   :  { %v493_v16 = vmul.f32 %v492_v12, %v490_v3  ;;  %v504_v17 = vmul.f32 %v503_v13, %v490_v3  ;;  %v529_v18 = vmul.f32 %v1724_v14, %v1724_v14 }
 0x640   :  { %v505_v20 = vadd.f32 0.014752088, %v504_v17  ;;  %v494_v21 = vadd.f32 0.0036580483, %v493_v16  ;;  %v530_v48 = vmin.f32 %v529_v18, 16.0 }
 0x642   :  { %v506_v23 = vmul.f32 %v505_v20, %v490_v3  ;;  %v531_v24 = vmul.f32 2.1237322e-06, %v530_v48  ;;  %v542_v25 = vmul.f32 3.8918573e-05, %v530_v48  ;;  %v495_v27 = vmul.f32 %v494_v21, %v490_v3 }
 0x644   :  { %v507_v53 = vadd.f32 0.112945676, %v506_v23  ;;  %v532_v28 = vadd.f32 0.00028619796, %v531_v24  ;;  %v543_v29 = vadd.f32 0.001143296, %v542_v25 }
 0x645   :  { %v496_v37 = vadd.f32 0.05243302, %v495_v27  ;;  %v485_v24 = vmul.f32 0.5, %v1708_v63 }
 0x646   :  { %v508_v31 = vmul.f32 %v507_v53, %v490_v3  ;;  %v533_v32 = vmul.f32 %v532_v28, %v530_v48  ;;  %v544_v33 = vmul.f32 %v543_v29, %v530_v48 }
 0x647   :  { %v497_v43 = vmul.f32 %v496_v37, %v490_v3 }
 0x648   :  { %v509_v35 = vadd.f32 0.4994258, %v508_v31  ;;  %v545_v38 = vadd.f32 0.014752088, %v544_v33  ;;  %v534_v40 = vadd.f32 0.0036580483, %v533_v32 }
 0x649   :  { %v498_v47 = vadd.f32 0.18741608, %v497_v43  ;;  %v486_v31 = vmul.f32 0.5, %v1718_v9  ;;  %v573_v33 = vperm.slane %v1603_v36, 7 }
 0x64a   :  { %v510_v39 = vmul.f32 %v509_v35, %v490_v3  ;;  %v546_v41 = vmul.f32 %v545_v38, %v530_v48  ;;  %v535_v45 = vmul.f32 %v534_v40, %v530_v48 }
 0x64b   :  { %v499_v54 = vmul.f32 %v498_v47, %v490_v3 }
 0x64c   :  { %v511_v42 = vadd.f32 1.0, %v510_v39  ;;  %v547_v44 = vadd.f32 0.112945676, %v546_v41  ;;  %v536_v50 = vadd.f32 0.05243302, %v535_v45 }
 0x64d   :  { %v500_v62 = vadd.f32 1.1283791, %v499_v54 }
 0x64e   :  { %1467 = vrcp.f32 %v511_v42  ;;  %v548_v46 = vmul.f32 %v547_v44, %v530_v48  ;;  %v537_v58 = vmul.f32 %v536_v50, %v530_v48  ;;  %v523_v61 = vand.u32 2147483648, %v511_v42  ;;  %v1346_v50 = vld [vmem:[%s1976_s3 + $0xb0] sm:$0xff] }
 0x64f   :  { %v521_v4 = vand.u32 2147483647, %v511_v42  ;;  %vm517_vm1 = vweird.f32 %v511_v42  ;;  %v501_v12 = vmul.f32 %v500_v62, %v1711_v0 }
 0x650   :  { %v549_v49 = vadd.f32 0.4994258, %v548_v46  ;;  %v538_v6 = vadd.f32 0.18741608, %v537_v58  ;;  %v524_v8 = vor.u32 1.1754944e-38, %v523_v61 }
 0x651   :  { %vm522_vm3 = vcmp.eq.f32.partialorder %v521_v4, 8.507059e+37 }
 0x652   :  { %v550_v51 = vmul.f32 %v549_v49, %v530_v48  ;;  %v539_v15 = vmul.f32 %v538_v6, %v530_v48 }
 0x654   :  { %v1468_v52 = vpop.eup %1467  ;;  %v551_v57 = vadd.f32 1.0, %v550_v51  ;;  %v540_v21 = vadd.f32 1.1283791, %v539_v15  ;;  %v1345_v51 = vld [vmem:[%s1976_s3 + $0xa8] sm:$0xff] }
 0x655   :  { %v513_v56 = vmul.f32 %v1468_v52, %v511_v42  ;;  %vm518_vm15 = vweird.f32 %v1468_v52 }
 0x656   :  { %1469 = vrcp.f32 %v551_v57  ;;  %vm519_vm2 = vmor %vm517_vm1, %vm518_vm15  ;;  %v563_v20 = vand.u32 2147483648, %v551_v57  ;;  %v561_v23 = vand.u32 2147483647, %v551_v57  ;;  %vm557_vm5 = vweird.f32 %v551_v57 }
 0x657   :  { %v514_v59 = vsub.f32 1.0, %v513_v56  ;;  %v541_v48 = vmul.f32 %v540_v21, %v1724_v14 }
 0x658   :  { %v564_v53 = vor.u32 1.1754944e-38, %v563_v20  ;;  %vm562_vm9 = vcmp.eq.f32.partialorder %v561_v23, 8.507059e+37 }
 0x659   :  { %v515_v2 = vmul.f32 %v1468_v52, %v514_v59 }
 0x65b   :  { %v516_v7 = vadd.f32 %v1468_v52, %v515_v2 }
 0x65c   :  { %v1470_v11 = vpop.eup %1469 }
 0x65d   :  { %v520_v13 = vsel %vm519_vm2, %v1468_v52, %v516_v7  ;;  %v553_v16 = vmul.f32 %v1470_v11, %v551_v57  ;;  %vm558_vm4 = vweird.f32 %v1470_v11  ;;  %v1344_v52 = vld [vmem:[%s1976_s3 + $0xa0] sm:$0xff]  ;;  %v1775_v7 = vld [vmem:[#allocation2 + $0x8] sm:$0xff] }
 0x65e   :  { %v525_v3 = vsel %vm522_vm3, %v524_v8, %v520_v13  ;;  %vm559_vm7 = vmor %vm557_vm5, %vm558_vm4  ;;  %v650_v13 = vperm.slane %v1775_v7, 0 }
 0x65f   :  { %v526_v17 = vmul.f32 %v525_v3, %v501_v12  ;;  %v554_v18 = vsub.f32 1.0, %v553_v16 }
 0x661   :  { %v1340_v19 = vclamps-f32 %v526_v17, 1.0  ;;  %v555_v22 = vmul.f32 %v1470_v11, %v554_v18  ;;  %v653_v18 = vperm.slane %v1775_v7, 1 }
 0x663   :  { %v569_v25 = vadd.f32 1.0, %v1340_v19  ;;  %v556_v26 = vadd.f32 %v1470_v11, %v555_v22 }
 0x665   :  { %v571_v0 = vmul.f32 %v569_v25, %v485_v24  ;;  %v560_v27 = vsel %vm559_vm7, %v1470_v11, %v556_v26 }
 0x666   :  { %v565_v28 = vsel %vm562_vm9, %v564_v53, %v560_v27  ;;  %v677_v53 = vperm.slane %v1775_v7, 2 }
 0x667   :  { %1342 = vmatmul.msk.f32.vlgmr.msra.gmra.mxu2 %vm574_vm6, %v571_v0  ;;  %v566_v29 = vmul.f32 %v565_v28, %v541_v48 }
 0x669   :  { %v1341_v30 = vclamps-f32 %v566_v29, 1.0 }
 0x66b   :  { %v570_v32 = vadd.f32 1.0, %v1341_v30 }
 0x66d   :  { %v572_v63 = vmul.f32 %v570_v32, %v486_v31 }
 0x66f   :  { %1343 = vmatmul.msk.f32.gmra.mxu2 %vm574_vm6, %v572_v63 }
 0x6ea   :  { %v598_v34 = vpop.f32.mrf.mxu2 }
 0x6eb   :  { %v599_v35 = vadd.f32 %v598_v34, %v573_v33 }
 0x6ed   :  { %v604_v37 = vadd.f32 %v599_v35, %v1699_v55 }
 0x6ef   :  { %v606_v14 = vsel %vm43_vm0, %v604_v37, 0.0 }
 0x6f0   :  { %607 = vadd.xlane.f32.xlu0 %v606_v14 }
 0x6f2   :  { %v601_v38 = vpop.f32.mrf.mxu2 }
 0x6f3   :  { %v602_v39 = vadd.f32 %v601_v38, %v573_v33 }
 0x6f5   :  { %v605_v40 = vadd.f32 %v602_v39, %v1703_v60  ;;  %v1347_v60 = vld [vmem:[%s1976_s3 + $0xb8] sm:$0xff] }
 0x6f6   :  { %696 = vmatpush.msra.mxu0 %v1347_v60 }
 0x6f7   :  { %v609_v41 = vsel %vm43_vm0, %v605_v40, 0.0 }
 0x6f8   :  { %610 = vadd.xlane.f32.xlu0 %v609_v41  ;;  %697 = vmatpush.msra.mxu0 %v1346_v50 }
 0x6fa   :  { %698 = vmatpush.msra.mxu0 %v1345_v51 }
 0x6fc   :  { %699 = vmatpush.msra.mxu0 %v1344_v52 }
 0x763   :  { %v608_v9 = vpop.xlane.xlu0 %607 }
 0x764   :  { %v612_v42 = vmul.f32 %v608_v9, %v1583_v10 }
 0x766   :  { %v614_v43 = vsub.f32 %v604_v37, %v612_v42 }
 0x768   :  { %v616_v44 = vmul.f32 %v614_v43, %v614_v43 }
 0x76a   :  { %v618_v36 = vsel %vm43_vm0, %v616_v44, 0.0 }
 0x76b   :  { %619 = vadd.xlane.f32.xlu0 %v618_v36  ;;  %v611_v45 = vpop.xlane.xlu0 %610 }
 0x76c   :  { %v613_v55 = vmul.f32 %v611_v45, %v1583_v10 }
 0x76e   :  { %v615_v46 = vsub.f32 %v605_v40, %v613_v55 }
 0x770   :  { %v617_v47 = vmul.f32 %v615_v46, %v615_v46 }
 0x772   :  { %v621_v49 = vsel %vm43_vm0, %v617_v47, 0.0 }
 0x773   :  { %622 = vadd.xlane.f32.xlu0 %v621_v49 }
 0x7de   :  { %v620_v54 = vpop.xlane.xlu0 %619 }
 0x7df   :  { %v624_v56 = vmul.f32 %v620_v54, %v1583_v10 }
 0x7e1   :  { %v626_v57 = vadd.f32 1e-12, %v624_v56 }
 0x7e3   :  { %1471 = vrsqrt.f32 %v626_v57  ;;  %vm634_vm11 = vweird.f32 %v626_v57 }
 0x7e6   :  { %v623_v58 = vpop.xlane.xlu0 %622 }
 0x7e7   :  { %v625_v59 = vmul.f32 %v623_v58, %v1583_v10 }
 0x7e9   :  { %v1472_v61 = vpop.eup %1471  ;;  %v627_v2 = vadd.f32 1e-12, %v625_v59 }
 0x7ea   :  { %v629_v62 = vmul.f32 %v1472_v61, %v626_v57  ;;  %vm635_vm10 = vweird.f32 %v1472_v61 }
 0x7eb   :  { %1473 = vrsqrt.f32 %v627_v2  ;;  %vm636_vm12 = vmor %vm634_vm11, %vm635_vm10  ;;  %vm644_vm14 = vweird.f32 %v627_v2 }
 0x7ec   :  { %v630_v4 = vmul.f32 %v1472_v61, %v629_v62 }
 0x7ee   :  { %v631_v6 = vmul.f32 0.5, %v630_v4 }
 0x7f0   :  { %v632_v8 = vsub.f32 1.5, %v631_v6 }
 0x7f1   :  { %v1474_v11 = vpop.eup %1473 }
 0x7f2   :  { %v633_v12 = vmul.f32 %v1472_v61, %v632_v8  ;;  %v639_v3 = vmul.f32 %v1474_v11, %v627_v2  ;;  %vm645_vm13 = vweird.f32 %v1474_v11 }
 0x7f3   :  { %vm646_vm15 = vmor %vm644_vm14, %vm645_vm13 }
 0x7f4   :  { %v637_v15 = vsel %vm636_vm12, %v1472_v61, %v633_v12  ;;  %v640_v17 = vmul.f32 %v1474_v11, %v639_v3 }
 0x7f5   :  { %v648_v16 = vmul.f32 %v637_v15, %v614_v43 }
 0x7f6   :  { %v641_v20 = vmul.f32 0.5, %v640_v17  ;;  %v1361_v17 = vld [vmem:[%s1976_s3 + $0x128] sm:$0xff] }
 0x7f7   :  { %v651_v19 = vmul.f32 %v650_v13, %v648_v16 }
 0x7f8   :  { %v642_v21 = vsub.f32 1.5, %v641_v20 }
 0x7f9   :  { %v1779_v22 = vadd.f32 %v653_v18, %v651_v19 }
 0x7fa   :  { %v643_v23 = vmul.f32 %v1474_v11, %v642_v21 }
 0x7fb   :  { %1364 = vmatmul.msk.f32.vlgmr.msra.gmra.mxu0 %vm43_vm0, %v1779_v22 }
 0x7fc   :  { %v647_v24 = vsel %vm646_vm15, %v1474_v11, %v643_v23 }
 0x7fd   :  { %v649_v25 = vmul.f32 %v647_v24, %v615_v46 }
 0x7ff   :  { %v652_v26 = vmul.f32 %v650_v13, %v649_v25 }
 0x801   :  { %v1783_v0 = vadd.f32 %v653_v18, %v652_v26 }
 0x803   :  { %1365 = vmatmul.msk.f32.gmra.mxu0 %vm43_vm0, %v1783_v0 }
 0x878   :  { %v701_v48 = vpop.f32.mrf.mxu0 }
 0x879   :  { %v702_v27 = vadd.f32 %v701_v48, %v677_v53 }
 0x87b   :  { %709 = vrot.lane.b32.xlu0 %v702_v27, %s1538_s11 }
 0x880   :  { %v704_v28 = vpop.f32.mrf.mxu0 }
 0x881   :  { %v705_v29 = vadd.f32 %v704_v28, %v677_v53  ;;  %v1360_v28 = vld [vmem:[%s1976_s3 + $0x120] sm:$0xff] }
 0x883   :  { %805 = vrot.lane.b32.xlu0 %v702_v27, %s1537_s10  ;;  %807 = vrot.lane.b32.xlu1 %v705_v29, %s1537_s10  ;;  %v1411_v45 = vpack.i.bf16 %v702_v27, %v705_v29 }
 0x884   :  { %711 = vrot.lane.b32.xlu2 %v705_v29, %s1538_s11 }
 0x88b   :  { %803 = vrot.lane.b32.xlu0 %v705_v29, %s1539_s12 }
 0x88c   :  { %801 = vrot.lane.b32.xlu2 %v702_v27, %s1539_s12 }
 0x8de   :  { %v712_v30 = vpop.permute.xlu2 %711 }
 0x8df   :  { %1366 = vmatpush.xpose.msk.msra.mxu1 %vm157_vm8, %v712_v30  ;;  %v1362_v30 = vld [vmem:[%s1976_s3 + $0x130] sm:$0xff] }
 0x8e6   :  { %v802_v33 = vpop.permute.xlu2 %801 }
 0x8ed   :  { %v710_v31 = vpop.permute.xlu0 %709 }
 0x8ee   :  { %1367 = vmatpush.xpose.msk.msra.mxu1 %vm157_vm8, %v710_v31 }
 0x8f1   :  { %1368 = vmatmul.msk.f32.vlgmr.msra.gmra.mxu1 %vm157_vm8, %v702_v27 }
 0x8f5   :  { %v808_v32 = vpop.permute.xlu1 %807  ;;  %v806_v63 = vpop.permute.xlu0 %805 }
 0x8f6   :  { %1372 = vmatpush.xpose.msk.msrb.mxu2 %vm157_vm8, %v808_v32 }
 0x8f9   :  { %1369 = vmatmul.msk.f32.gmra.mxu1 %vm157_vm8, %v705_v29  ;;  %v1363_v29 = vld [vmem:[%s1976_s3 + $0x138] sm:$0xff] }
 0x8fa   :  { %1373 = vmatpush.xpose.msk.msrb.mxu2 %vm157_vm8, %v806_v63  ;;  %917 = vmatpush.msrb.mxu1 %v1363_v29 }
 0x8fc   :  { %918 = vmatpush.msrb.mxu1 %v1362_v30 }
 0x8fd   :  { %1374 = vmatmul.msk.f32.vlgmr.msrb.gmra.mxu2 %vm157_vm8, %v802_v33  ;;  %v804_v34 = vpop.permute.xlu0 %803 }
 0x905   :  { %1375 = vmatmul.msk.f32.gmra.mxu2 %vm157_vm8, %v804_v34 }
 0x96e   :  { %v738_v35 = vpop.f32.mrf.mxu1 }
 0x96f   :  { %v739_v37 = vadd.f32 %v738_v35, %v1633_v1 }
 0x971   :  { %v744_v14 = vsel %vm157_vm8, %v739_v37, -inf }
 0x972   :  { %745 = vmax.xlane.f32.xlu2 %v744_v14  ;;  %v957_v14 = vperm.slane %v1775_v7, 3 }
 0x976   :  { %v741_v38 = vpop.f32.mrf.mxu1 }
 0x977   :  { %v742_v39 = vadd.f32 %v741_v38, %v1640_v5 }
 0x979   :  { %v747_v40 = vsel %vm157_vm8, %v742_v39, -inf }
 0x97a   :  { %748 = vmax.xlane.f32.xlu1 %v747_v40 }
 0x980   :  { %v834_v41 = vpop.f32.mrf.mxu2 }
 0x981   :  { %v835_v9 = vadd.f32 %v834_v41, %v1633_v1 }
 0x983   :  { %v840_v42 = vsel %vm157_vm8, %v835_v9, -inf }
 0x984   :  { %841 = vmax.xlane.f32.xlu0 %v840_v42 }
 0x988   :  { %v837_v43 = vpop.f32.mrf.mxu2 }
 0x989   :  { %v838_v44 = vadd.f32 %v837_v43, %v1640_v5 }
 0x98b   :  { %v843_v36 = vsel %vm157_vm8, %v838_v44, -inf }
 0x98c   :  { %844 = vmax.xlane.f32.xlu2 %v843_v36 }
 0x9a4   :  { %1412 = vrot.lane.b32.xlu2 %v1411_v45, %s1540_s1 }
 0x9e5   :  { %v746_v55 = vpop.xlane.xlu2 %745 }
 0x9e6   :  { %v750_v46 = vsub.f32 %v739_v37, %v746_v55 }
 0x9e8   :  { %v752_v47 = vmul.f32 1.442695, %v750_v46 }
 0x9ea   :  { %1475 = vpow2.f32 %v752_v47 }
 0x9ed   :  { %v749_v49 = vpop.xlane.xlu1 %748 }
 0x9ee   :  { %v751_v60 = vsub.f32 %v742_v39, %v749_v49 }
 0x9f0   :  { %v1476_v50 = vpop.eup %1475  ;;  %v754_v1 = vmul.f32 1.442695, %v751_v60 }
 0x9f1   :  { %v756_v51 = vsel %vm157_vm8, %v1476_v50, 0.0 }
 0x9f2   :  { %1477 = vpow2.f32 %v754_v1  ;;  %757 = vadd.xlane.f32.xlu1 %v756_v51 }
 0x9f7   :  { %v842_v5 = vpop.xlane.xlu0 %841 }
 0x9f8   :  { %v1478_v52 = vpop.eup %1477  ;;  %v846_v54 = vsub.f32 %v835_v9, %v842_v5  ;;  %v1349_v5 = vld [vmem:[%s1976_s3 + $0xc8] sm:$0xff] }
 0x9f9   :  { %v759_v56 = vsel %vm157_vm8, %v1478_v52, 0.0 }
 0x9fa   :  { %760 = vadd.xlane.f32.xlu0 %v759_v56  ;;  %v848_v57 = vmul.f32 1.442695, %v846_v54  ;;  %v1348_v54 = vld [vmem:[%s1976_s3 + $0xc0] sm:$0xff] }
 0x9fc   :  { %1479 = vpow2.f32 %v848_v57 }
 0x9ff   :  { %v845_v58 = vpop.xlane.xlu2 %844 }
 0xa00   :  { %v847_v59 = vsub.f32 %v838_v44, %v845_v58 }
 0xa02   :  { %v1480_v61 = vpop.eup %1479  ;;  %v850_v62 = vmul.f32 1.442695, %v847_v59 }
 0xa03   :  { %v852_v2 = vsel %vm157_vm8, %v1480_v61, 0.0 }
 0xa04   :  { %1481 = vpow2.f32 %v850_v62  ;;  %853 = vadd.xlane.f32.xlu1 %v852_v2 }
 0xa07   :  { %v1413_v4 = vpop.permute.xlu2 %1412 }
 0xa08   :  { %v1414_v6 = vunpack.i.l.bf16 %v1413_v4  ;;  %v1415_v11 = vunpack.i.h.bf16 %v1413_v4 }
 0xa0a   :  { %v1482_v8 = vpop.eup %1481  ;;  %792 = vmatpush.msra.mxu3 %v1414_v6 }
 0xa0b   :  { %v855_v12 = vsel %vm157_vm8, %v1482_v8, 0.0 }
 0xa0c   :  { %793 = vmatpush.msra.mxu3 %v1415_v11  ;;  %856 = vadd.xlane.f32.xlu1 %v855_v12 }
 0xa0e   :  { %1417 = vrot.lane.b32.xlu0 %v1411_v45, %s1541_s17  ;;  %946 = vmatpush.msrb.mxu3 %v1361_v17 }
 0xa10   :  { %947 = vmatpush.msrb.mxu3 %v1360_v28  ;;  %v1010_v28 = vperm.slane %v1775_v7, 6 }
 0xa65   :  { %v758_v13 = vpop.xlane.xlu1 %757 }
 0xa66   :  { %1483 = vrcp.f32 %v758_v13 }
 0xa6c   :  { %v1484_v3 = vpop.eup %1483 }
 0xa6d   :  { %v764_v15 = vmul.f32 %v1484_v3, %v1476_v50  ;;  %v761_v16 = vpop.xlane.xlu0 %760 }
 0xa6e   :  { %1485 = vrcp.f32 %v761_v16 }
 0xa6f   :  { %1370 = vmatmul.msk.f32.vlgmr.msra.gmra.mxu3 %vm157_vm8, %v764_v15  ;;  %v1004_v15 = vperm.slane %v1775_v7, 4 }
 0xa74   :  { %v1486_v18 = vpop.eup %1485 }
 0xa75   :  { %v765_v19 = vmul.f32 %v1486_v18, %v1478_v52  ;;  %v1350_v52 = vld [vmem:[%s1976_s3 + $0xd0] sm:$0xff] }
 0xa77   :  { %1371 = vmatmul.msk.f32.gmra.mxu3 %vm157_vm8, %v765_v19  ;;  %v854_v20 = vpop.xlane.xlu1 %853  ;;  %v1007_v19 = vperm.slane %v1775_v7, 5 }
 0xa78   :  { %1487 = vrcp.f32 %v854_v20 }
 0xa7e   :  { %v1488_v24 = vpop.eup %1487 }
 0xa7f   :  { %v857_v21 = vpop.xlane.xlu1 %856  ;;  %v860_v53 = vmul.f32 %v1488_v24, %v1480_v61 }
 0xa80   :  { %v1418_v23 = vpop.permute.xlu0 %1417  ;;  %1489 = vrcp.f32 %v857_v21 }
 0xa81   :  { %v1419_v25 = vunpack.i.l.bf16 %v1418_v23  ;;  %v1420_v26 = vunpack.i.h.bf16 %v1418_v23 }
 0xa83   :  { %888 = vmatpush.msrb.mxu0 %v1419_v25 }
 0xa85   :  { %889 = vmatpush.msrb.mxu0 %v1420_v26 }
 0xa86   :  { %1376 = vmatmul.msk.f32.vlgmr.msrb.gmra.mxu0 %vm157_vm8, %v860_v53  ;;  %v1490_v48 = vpop.eup %1489 }
 0xa87   :  { %v861_v27 = vmul.f32 %v1490_v48, %v1482_v8 }
 0xa8e   :  { %1377 = vmatmul.msk.f32.gmra.mxu0 %vm157_vm8, %v861_v27 }
 0xaf2   :  { %v795_v31 = vpop.f32.mrf.mxu3 }
 0xaf3   :  { %1380 = vmatmul.msk.f32.vlgmr.msrb.gmra.mxu3 %vm157_vm8, %v795_v31 }
 0xafa   :  { %v798_v32 = vpop.f32.mrf.mxu3 }
 0xafb   :  { %1381 = vmatmul.msk.f32.gmra.mxu3 %vm157_vm8, %v798_v32 }
 0xb03   :  { %v891_v63 = vpop.f32.mrf.mxu0 }
 0xb04   :  { %1378 = vmatmul.msk.f32.vlgmr.msrb.gmra.mxu1 %vm157_vm8, %v891_v63 }
 0xb0b   :  { %v894_v33 = vpop.f32.mrf.mxu0 }
 0xb0c   :  { %1379 = vmatmul.msk.f32.gmra.mxu1 %vm157_vm8, %v894_v33 }
 0xb76   :  { %v949_v34 = vpop.f32.mrf.mxu3 }
 0xb7e   :  { %v952_v41 = vpop.f32.mrf.mxu3 }
 0xb81   :  { %v920_v35 = vpop.f32.mrf.mxu1 }
 0xb82   :  { %v950_v37 = vadd.f32 %v949_v34, %v920_v35  ;;  %v1359_v34 = vld [vmem:[%s1976_s3 + $0x118] sm:$0xff] }
 0xb83   :  { %1143 = vmatpush.msra.mxu0 %v1359_v34 }
 0xb84   :  { %v955_v38 = vadd.f32 %v950_v37, %v1779_v22 }
 0xb86   :  { %v958_v39 = vadd.f32 %v957_v14, %v955_v38  ;;  %v1358_v38 = vld [vmem:[%s1976_s3 + $0x110] sm:$0xff] }
 0xb87   :  { %1144 = vmatpush.msra.mxu0 %v1358_v38 }
 0xb88   :  { %v960_v40 = vsel %vm43_vm0, %v958_v39, 0.0 }
 0xb89   :  { %961 = vadd.xlane.f32.xlu1 %v960_v40  ;;  %v923_v9 = vpop.f32.mrf.mxu1 }
 0xb8a   :  { %v953_v42 = vadd.f32 %v952_v41, %v923_v9  ;;  %v1357_v9 = vld [vmem:[%s1976_s3 + $0x108] sm:$0xff] }
 0xb8b   :  { %1145 = vmatpush.msra.mxu0 %v1357_v9 }
 0xb8c   :  { %v956_v43 = vadd.f32 %v953_v42, %v1783_v0  ;;  %v1351_v0 = vld [vmem:[%s1976_s3 + $0xd8] sm:$0xff] }
 0xb8d   :  { %1029 = vmatpush.msra.mxu2 %v1351_v0 }
 0xb8e   :  { %v959_v44 = vadd.f32 %v957_v14, %v956_v43 }
 0xb8f   :  { %1030 = vmatpush.msra.mxu2 %v1350_v52 }
 0xb90   :  { %v963_v36 = vsel %vm43_vm0, %v959_v44, 0.0 }
 0xb91   :  { %964 = vadd.xlane.f32.xlu2 %v963_v36  ;;  %1031 = vmatpush.msra.mxu2 %v1349_v5  ;;  %v1356_v36 = vld [vmem:[%s1976_s3 + $0x100] sm:$0xff]  ;;  %v1353_v5 = vld [vmem:[%s1976_s3 + $0xe8] sm:$0xff] }
 0xb92   :  { %1146 = vmatpush.msra.mxu0 %v1356_v36 }
 0xb93   :  { %1032 = vmatpush.msra.mxu2 %v1348_v54 }
 0xbfc   :  { %v962_v45 = vpop.xlane.xlu1 %961 }
 0xbfd   :  { %v966_v55 = vmul.f32 %v962_v45, %v1583_v10 }
 0xbff   :  { %v968_v46 = vsub.f32 %v958_v39, %v966_v55 }
 0xc01   :  { %v970_v47 = vmul.f32 %v968_v46, %v968_v46 }
 0xc03   :  { %v972_v22 = vsel %vm43_vm0, %v970_v47, 0.0  ;;  %v1355_v47 = vld [vmem:[%s1976_s3 + $0xf8] sm:$0xff] }
 0xc04   :  { %973 = vadd.xlane.f32.xlu0 %v972_v22  ;;  %v965_v49 = vpop.xlane.xlu2 %964  ;;  %1147 = vmatpush.msra.mxu0 %v1355_v47 }
 0xc05   :  { %v967_v60 = vmul.f32 %v965_v49, %v1583_v10 }
 0xc07   :  { %v969_v50 = vsub.f32 %v959_v44, %v967_v60 }
 0xc09   :  { %v971_v1 = vmul.f32 %v969_v50, %v969_v50 }
 0xc0b   :  { %v975_v51 = vsel %vm43_vm0, %v971_v1, 0.0 }
 0xc0c   :  { %976 = vadd.xlane.f32.xlu1 %v975_v51 }
 0xc77   :  { %v974_v56 = vpop.xlane.xlu0 %973 }
 0xc78   :  { %v978_v57 = vmul.f32 %v974_v56, %v1583_v10 }
 0xc7a   :  { %v980_v58 = vadd.f32 1e-12, %v978_v57 }
 0xc7c   :  { %1491 = vrsqrt.f32 %v980_v58  ;;  %vm988_vm1 = vweird.f32 %v980_v58 }
 0xc7f   :  { %v977_v59 = vpop.xlane.xlu1 %976 }
 0xc80   :  { %v979_v61 = vmul.f32 %v977_v59, %v1583_v10 }
 0xc82   :  { %v1492_v62 = vpop.eup %1491  ;;  %v981_v2 = vadd.f32 1e-12, %v979_v61 }
 0xc83   :  { %v983_v4 = vmul.f32 %v1492_v62, %v980_v58  ;;  %vm989_vm8 = vweird.f32 %v1492_v62  ;;  %v1352_v58 = vld [vmem:[%s1976_s3 + $0xe0] sm:$0xff] }
 0xc84   :  { %1493 = vrsqrt.f32 %v981_v2  ;;  %vm990_vm2 = vmor %vm988_vm1, %vm989_vm8  ;;  %vm998_vm4 = vweird.f32 %v981_v2 }
 0xc85   :  { %v984_v6 = vmul.f32 %v1492_v62, %v983_v4 }
 0xc87   :  { %v985_v8 = vmul.f32 0.5, %v984_v6 }
 0xc89   :  { %v986_v11 = vsub.f32 1.5, %v985_v8 }
 0xc8a   :  { %v1494_v12 = vpop.eup %1493 }
 0xc8b   :  { %v987_v13 = vmul.f32 %v1492_v62, %v986_v11  ;;  %v993_v3 = vmul.f32 %v1494_v12, %v981_v2  ;;  %vm999_vm3 = vweird.f32 %v1494_v12 }
 0xc8c   :  { %vm1000_vm5 = vmor %vm998_vm4, %vm999_vm3 }
 0xc8d   :  { %v991_v16 = vsel %vm990_vm2, %v1492_v62, %v987_v13  ;;  %v994_v17 = vmul.f32 %v1494_v12, %v993_v3 }
 0xc8e   :  { %v1002_v18 = vmul.f32 %v991_v16, %v968_v46 }
 0xc8f   :  { %v995_v20 = vmul.f32 0.5, %v994_v17 }
 0xc90   :  { %v1005_v21 = vmul.f32 %v1004_v15, %v1002_v18 }
 0xc91   :  { %v996_v23 = vsub.f32 1.5, %v995_v20 }
 0xc92   :  { %v1861_v24 = vadd.f32 %v1007_v19, %v1005_v21 }
 0xc93   :  { %v997_v25 = vmul.f32 %v1494_v12, %v996_v23 }
 0xc94   :  { %1382 = vmatmul.msk.f32.vlgmr.msra.gmra.mxu2 %vm43_vm0, %v1861_v24 }
 0xc95   :  { %v1001_v26 = vsel %vm1000_vm5, %v1494_v12, %v997_v25  ;;  %vm1275_vm5 = vcmask 785408  }
 0xc96   :  { %v1003_v53 = vmul.f32 %v1001_v26, %v969_v50  ;;  %v1354_v50 = vld [vmem:[%s1976_s3 + $0xf0] sm:$0xff] }
 0xc97   :  { %1148 = vmatpush.msra.mxu0 %v1354_v50 }
 0xc98   :  { %v1006_v48 = vmul.f32 %v1004_v15, %v1003_v53 }
 0xc99   :  { %1149 = vmatpush.msra.mxu0 %v1353_v5 }
 0xc9a   :  { %v1865_v27 = vadd.f32 %v1007_v19, %v1006_v48 }
 0xc9b   :  { %1150 = vmatpush.msra.mxu0 %v1352_v58 }
 0xc9c   :  { %1383 = vmatmul.msk.f32.gmra.mxu2 %vm43_vm0, %v1865_v27 }
 0xd17   :  { %v1034_v29 = vpop.f32.mrf.mxu2 }
 0xd18   :  { %v1870_v30 = vadd.f32 %v1034_v29, %v1010_v28 }
 0xd1a   :  { %v1873_v31 = vmul.f32 0.70710677, %v1870_v30  ;;  %v1040_v47 = vmul.f32 0.5, %v1870_v30  ;;  %v1128_v30 = vperm.slane %v1775_v7, 7 }
 0xd1c   :  { %v1044_v32 = vmul.f32 %v1873_v31, %v1873_v31 }
 0xd1e   :  { %v1045_v63 = vmin.f32 %v1044_v32, 16.0 }
 0xd1f   :  { %v1037_v33 = vpop.f32.mrf.mxu2 }
 0xd20   :  { %v1046_v35 = vmul.f32 2.1237322e-06, %v1045_v63  ;;  %v1057_v37 = vmul.f32 3.8918573e-05, %v1045_v63  ;;  %v1880_v14 = vadd.f32 %v1037_v33, %v1010_v28 }
 0xd22   :  { %v1047_v39 = vadd.f32 0.00028619796, %v1046_v35  ;;  %v1058_v40 = vadd.f32 0.001143296, %v1057_v37  ;;  %v1886_v41 = vmul.f32 0.70710677, %v1880_v14 }
 0xd24   :  { %v1048_v42 = vmul.f32 %v1047_v39, %v1045_v63  ;;  %v1059_v43 = vmul.f32 %v1058_v40, %v1045_v63  ;;  %v1084_v44 = vmul.f32 %v1886_v41, %v1886_v41 }
 0xd26   :  { %v1060_v45 = vadd.f32 0.014752088, %v1059_v43  ;;  %v1049_v55 = vadd.f32 0.0036580483, %v1048_v42  ;;  %v1085_v46 = vmin.f32 %v1084_v44, 16.0 }
 0xd28   :  { %v1061_v22 = vmul.f32 %v1060_v45, %v1045_v63  ;;  %v1086_v49 = vmul.f32 2.1237322e-06, %v1085_v46  ;;  %v1097_v60 = vmul.f32 3.8918573e-05, %v1085_v46  ;;  %v1050_v51 = vmul.f32 %v1049_v55, %v1045_v63 }
 0xd2a   :  { %v1062_v1 = vadd.f32 0.112945676, %v1061_v22  ;;  %v1087_v0 = vadd.f32 0.00028619796, %v1086_v49  ;;  %v1098_v52 = vadd.f32 0.001143296, %v1097_v60 }
 0xd2b   :  { %v1051_v61 = vadd.f32 0.05243302, %v1050_v51 }
 0xd2c   :  { %v1063_v54 = vmul.f32 %v1062_v1, %v1045_v63  ;;  %v1088_v56 = vmul.f32 %v1087_v0, %v1085_v46  ;;  %v1099_v57 = vmul.f32 %v1098_v52, %v1085_v46  ;;  %v1041_v52 = vmul.f32 0.5, %v1880_v14 }
 0xd2d   :  { %v1052_v11 = vmul.f32 %v1051_v61, %v1045_v63 }
 0xd2e   :  { %v1064_v59 = vadd.f32 0.4994258, %v1063_v54  ;;  %v1100_v62 = vadd.f32 0.014752088, %v1099_v57  ;;  %v1089_v4 = vadd.f32 0.0036580483, %v1088_v56 }
 0xd2f   :  { %v1053_v15 = vadd.f32 0.18741608, %v1052_v11 }
 0xd30   :  { %v1065_v2 = vmul.f32 %v1064_v59, %v1045_v63  ;;  %v1101_v6 = vmul.f32 %v1100_v62, %v1085_v46  ;;  %v1090_v13 = vmul.f32 %v1089_v4, %v1085_v46 }
 0xd31   :  { %v1054_v20 = vmul.f32 %v1053_v15, %v1045_v63  ;;  %v1214_v15 = vld [vmem:[%s1977_s4 + $0x20] sm:$0xff] }
 0xd32   :  { %v1066_v8 = vadd.f32 1.0, %v1065_v2  ;;  %v1102_v12 = vadd.f32 0.112945676, %v1101_v6  ;;  %v1091_v17 = vadd.f32 0.05243302, %v1090_v13 }
 0xd33   :  { %v1055_v48 = vadd.f32 1.1283791, %v1054_v20 }
 0xd34   :  { %1495 = vrcp.f32 %v1066_v8  ;;  %v1103_v3 = vmul.f32 %v1102_v12, %v1085_v46  ;;  %v1092_v25 = vmul.f32 %v1091_v17, %v1085_v46  ;;  %v1078_v53 = vand.u32 2147483648, %v1066_v8  ;;  %v1210_v17 = vld [vmem:[%s1977_s4] sm:$0xff] }
 0xd35   :  { %v1076_v29 = vand.u32 2147483647, %v1066_v8  ;;  %vm1072_vm9 = vweird.f32 %v1066_v8  ;;  %v1056_v37 = vmul.f32 %v1055_v48, %v1873_v31 }
 0xd36   :  { %v1104_v16 = vadd.f32 0.4994258, %v1103_v3  ;;  %v1093_v32 = vadd.f32 0.18741608, %v1092_v25  ;;  %v1079_v34 = vor.u32 1.1754944e-38, %v1078_v53  ;;  %v1217_v53 = vld [vmem:[%s1977_s4 + $0x38] sm:$0xff] }
 0xd37   :  { %vm1077_vm11 = vcmp.eq.f32.partialorder %v1076_v29, 8.507059e+37 }
 0xd38   :  { %v1105_v18 = vmul.f32 %v1104_v16, %v1085_v46  ;;  %v1094_v39 = vmul.f32 %v1093_v32, %v1085_v46  ;;  %v1212_v16 = vld [vmem:[%s1977_s4 + $0x10] sm:$0xff]  ;;  %v1211_v32 = vld [vmem:[%s1977_s4 + $0x8] sm:$0xff] }
 0xd3a   :  { %v1496_v19 = vpop.eup %1495  ;;  %v1106_v23 = vadd.f32 1.0, %v1105_v18  ;;  %v1095_v36 = vadd.f32 1.1283791, %v1094_v39  ;;  %v1215_v18 = vld [vmem:[%s1977_s4 + $0x28] sm:$0xff]  ;;  %v1953_v39 = vld [vmem:[#allocation2 + $0x10] sm:$0xf] }
 0xd3b   :  { %v1068_v21 = vmul.f32 %v1496_v19, %v1066_v8  ;;  %vm1073_vm7 = vweird.f32 %v1496_v19 }
 0xd3c   :  { %1497 = vrcp.f32 %v1106_v23  ;;  %vm1074_vm10 = vmor %vm1072_vm9, %vm1073_vm7  ;;  %v1118_v44 = vand.u32 2147483648, %v1106_v23  ;;  %v1116_v55 = vand.u32 2147483647, %v1106_v23  ;;  %vm1112_vm13 = vweird.f32 %v1106_v23 }
 0xd3d   :  { %v1069_v26 = vsub.f32 1.0, %v1068_v21  ;;  %v1096_v50 = vmul.f32 %v1095_v36, %v1886_v41  ;;  %v1426_v21 = vpack.i.bf16 %v1215_v18, %v1214_v15 }
 0xd3e   :  { %v1119_v31 = vor.u32 1.1754944e-38, %v1118_v44  ;;  %vm1117_vm15 = vcmp.eq.f32.partialorder %v1116_v55, 8.507059e+37  ;;  %v1207_v55 = vperm.slane %v1953_v39, 1 }
 0xd3f   :  { %v1070_v28 = vmul.f32 %v1496_v19, %v1069_v26 }
 0xd41   :  { %v1071_v33 = vadd.f32 %v1496_v19, %v1070_v28 }
 0xd42   :  { %v1498_v35 = vpop.eup %1497 }
 0xd43   :  { %v1075_v38 = vsel %vm1074_vm10, %v1496_v19, %v1071_v33  ;;  %v1108_v40 = vmul.f32 %v1498_v35, %v1106_v23  ;;  %vm1113_vm12 = vweird.f32 %v1498_v35  ;;  %v1213_v19 = vld [vmem:[%s1977_s4 + $0x18] sm:$0xff] }
 0xd44   :  { %v1080_v63 = vsel %vm1077_vm11, %v1079_v34, %v1075_v38  ;;  %vm1114_vm14 = vmor %vm1112_vm13, %vm1113_vm12  ;;  %v1431_v23 = vpack.i.bf16 %v1213_v19, %v1212_v16 }
 0xd45   :  { %v1081_v9 = vmul.f32 %v1080_v63, %v1056_v37  ;;  %v1109_v42 = vsub.f32 1.0, %v1108_v40  ;;  %v1436_v37 = vpack.i.bf16 %v1211_v32, %v1210_v17 }
 0xd46   :  { %1432 = vrot.lane.b32.xlu0 %v1431_v23, %s1538_s11 }
 0xd47   :  { %v1384_v43 = vclamps-f32 %v1081_v9, 1.0  ;;  %v1110_v45 = vmul.f32 %v1498_v35, %v1109_v42 }
 0xd49   :  { %v1124_v22 = vadd.f32 1.0, %v1384_v43  ;;  %v1111_v49 = vadd.f32 %v1498_v35, %v1110_v45 }
 0xd4b   :  { %v1126_v60 = vmul.f32 %v1124_v22, %v1040_v47  ;;  %v1115_v46 = vsel %vm1114_vm14, %v1498_v35, %v1111_v49 }
 0xd4c   :  { %v1120_v1 = vsel %vm1117_vm15, %v1119_v31, %v1115_v46 }
 0xd4d   :  { %1386 = vmatmul.msk.f32.vlgmr.msra.gmra.mxu0 %vm574_vm6, %v1126_v60  ;;  %v1121_v51 = vmul.f32 %v1120_v1, %v1096_v50 }
 0xd4f   :  { %v1385_v0 = vclamps-f32 %v1121_v51, 1.0 }
 0xd51   :  { %v1125_v5 = vadd.f32 1.0, %v1385_v0 }
 0xd53   :  { %v1127_v54 = vmul.f32 %v1125_v5, %v1041_v52 }
 0xd55   :  { %1387 = vmatmul.msk.f32.gmra.mxu0 %vm574_vm6, %v1127_v54 }
 0xdca   :  { %v1152_v56 = vpop.f32.mrf.mxu0 }
 0xdcb   :  { %v1153_v57 = vadd.f32 %v1152_v56, %v1128_v30  ;;  %v1433_v56 = vpop.permute.xlu0 %1432 }
 0xdcd   :  { %v1158_v58 = vadd.f32 %v1153_v57, %v1861_v24 }
 0xdcf   :  { %v1160_v41 = vsel %vm43_vm0, %v1158_v58, 0.0 }
 0xdd0   :  { %1161 = vadd.xlane.f32.xlu1 %v1160_v41  ;;  %v1435_v41 = vunpack.i.h.bf16 %v1433_v56 }
 0xdd2   :  { %v1155_v59 = vpop.f32.mrf.mxu0 }
 0xdd3   :  { %v1156_v61 = vadd.f32 %v1155_v59, %v1128_v30  ;;  %v1434_v59 = vunpack.i.l.bf16 %v1433_v56 }
 0xdd5   :  { %v1159_v62 = vadd.f32 %v1156_v61, %v1865_v27  ;;  %v1216_v27 = vld [vmem:[%s1977_s4 + $0x30] sm:$0xff] }
 0xdd6   :  { %1237 = vmatpush.msra.mxu1 %v1216_v27  ;;  %v1421_v48 = vpack.i.bf16 %v1217_v53, %v1216_v27  ;;  %v1250_v27 = vperm.slane %v1953_v39, 3 }
 0xdd7   :  { %v1163_v2 = vsel %vm43_vm0, %v1159_v62, 0.0 }
 0xdd8   :  { %1164 = vadd.xlane.f32.xlu1 %v1163_v2  ;;  %1238 = vmatpush.msra.mxu1 %v1214_v15 }
 0xdd9   :  { %1422 = vrot.lane.b32.xlu2 %v1421_v48, %s1538_s11 }
 0xdda   :  { %1239 = vmatpush.msra.mxu1 %v1212_v16 }
 0xddc   :  { %1240 = vmatpush.msra.mxu1 %v1210_v17 }
 0xde1   :  { %1437 = vrot.lane.b32.xlu2 %v1436_v37, %s1538_s11 }
 0xe33   :  { %v1423_v0 = vpop.permute.xlu2 %1422 }
 0xe34   :  { %v1425_v52 = vunpack.i.h.bf16 %v1423_v0  ;;  %v1424_v5 = vunpack.i.l.bf16 %v1423_v0 }
 0xe36   :  { %v1279_v54 = vsel %vm1275_vm5, %v1424_v5, %v1425_v52 }
 0xe37   :  { %1302 = vmatpush.msra.mxu3 %v1279_v54 }
 0xe3b   :  { %v1438_v61 = vpop.permute.xlu2 %1437 }
 0xe3c   :  { %v1439_v2 = vunpack.i.l.bf16 %v1438_v61 }
 0xe43   :  { %v1162_v14 = vpop.xlane.xlu1 %1161 }
 0xe44   :  { %v1166_v4 = vmul.f32 %v1162_v14, %v1583_v10 }
 0xe46   :  { %v1168_v6 = vsub.f32 %v1158_v58, %v1166_v4  ;;  %v1277_v4 = vsel %vm1275_vm5, %v1434_v59, %v1435_v41 }
 0xe48   :  { %v1170_v8 = vmul.f32 %v1168_v6, %v1168_v6 }
 0xe4a   :  { %v1172_v7 = vsel %vm43_vm0, %v1170_v8, 0.0  ;;  %v1218_v8 = vperm.slane %v1953_v39, 2 }
 0xe4b   :  { %1173 = vadd.xlane.f32.xlu1 %v1172_v7  ;;  %v1165_v11 = vpop.xlane.xlu1 %1164 }
 0xe4c   :  { %v1167_v24 = vmul.f32 %v1165_v11, %v1583_v10 }
 0xe4e   :  { %v1169_v12 = vsub.f32 %v1159_v62, %v1167_v24  ;;  %v1440_v62 = vunpack.i.h.bf16 %v1438_v61 }
 0xe50   :  { %v1171_v13 = vmul.f32 %v1169_v12, %v1169_v12 }
 0xe52   :  { %v1175_v3 = vsel %vm43_vm0, %v1171_v13, 0.0 }
 0xe53   :  { %1176 = vadd.xlane.f32.xlu1 %v1175_v3 }
 0xe6c   :  { %1427 = vrot.lane.b32.xlu1 %v1426_v21, %s1538_s11 }
 0xebe   :  { %v1174_v20 = vpop.xlane.xlu1 %1173 }
 0xebf   :  { %v1178_v25 = vmul.f32 %v1174_v20, %v1583_v10 }
 0xec1   :  { %v1180_v26 = vadd.f32 1e-12, %v1178_v25 }
 0xec3   :  { %1499 = vrsqrt.f32 %v1180_v26  ;;  %vm1188_vm8 = vweird.f32 %v1180_v26 }
 0xec6   :  { %v1177_v28 = vpop.xlane.xlu1 %1176 }
 0xec7   :  { %v1179_v29 = vmul.f32 %v1177_v28, %v1583_v10  ;;  %v1204_v10 = vperm.slane %v1953_v39, 0 }
 0xec9   :  { %v1500_v33 = vpop.eup %1499  ;;  %v1181_v35 = vadd.f32 1e-12, %v1179_v29 }
 0xeca   :  { %v1183_v34 = vmul.f32 %v1500_v33, %v1180_v26  ;;  %vm1189_vm6 = vweird.f32 %v1500_v33 }
 0xecb   :  { %1501 = vrsqrt.f32 %v1181_v35  ;;  %vm1190_vm1 = vmor %vm1188_vm8, %vm1189_vm6  ;;  %vm1198_vm3 = vweird.f32 %v1181_v35 }
 0xecc   :  { %v1184_v38 = vmul.f32 %v1500_v33, %v1183_v34 }
 0xece   :  { %v1185_v63 = vmul.f32 0.5, %v1184_v38 }
 0xed0   :  { %v1186_v40 = vsub.f32 1.5, %v1185_v63 }
 0xed1   :  { %v1502_v9 = vpop.eup %1501 }
 0xed2   :  { %v1187_v42 = vmul.f32 %v1500_v33, %v1186_v40  ;;  %v1193_v43 = vmul.f32 %v1502_v9, %v1181_v35  ;;  %vm1199_vm2 = vweird.f32 %v1502_v9 }
 0xed3   :  { %vm1200_vm4 = vmor %vm1198_vm3, %vm1199_vm2 }
 0xed4   :  { %v1191_v44 = vsel %vm1190_vm1, %v1500_v33, %v1187_v42  ;;  %v1194_v45 = vmul.f32 %v1502_v9, %v1193_v43 }
 0xed5   :  { %v1202_v36 = vmul.f32 %v1191_v44, %v1168_v6  ;;  %v1276_v6 = vsel %vm1275_vm5, %v1439_v2, %v1440_v62 }
 0xed6   :  { %v1195_v22 = vmul.f32 0.5, %v1194_v45 }
 0xed7   :  { %v1205_v47 = vmul.f32 %v1204_v10, %v1202_v36 }
 0xed8   :  { %v1196_v49 = vsub.f32 1.5, %v1195_v22 }
 0xed9   :  { %v1208_v60 = vadd.f32 %v1207_v55, %v1205_v47 }
 0xeda   :  { %v1197_v31 = vmul.f32 %v1502_v9, %v1196_v49 }
 0xedb   :  { %1388 = vmatmul.msk.f32.vlgmr.msra.gmra.mxu1 %vm43_vm0, %v1208_v60 }
 0xedc   :  { %v1201_v50 = vsel %vm1200_vm4, %v1502_v9, %v1197_v31 }
 0xedd   :  { %v1203_v46 = vmul.f32 %v1201_v50, %v1169_v12 }
 0xede   :  { %v1428_v30 = vpop.permute.xlu1 %1427 }
 0xedf   :  { %v1206_v1 = vmul.f32 %v1204_v10, %v1203_v46  ;;  %v1430_v57 = vunpack.i.h.bf16 %v1428_v30  ;;  %v1429_v58 = vunpack.i.l.bf16 %v1428_v30 }
 0xee1   :  { %v1209_v51 = vadd.f32 %v1207_v55, %v1206_v1  ;;  %v1278_v14 = vsel %vm1275_vm5, %v1429_v58, %v1430_v57 }
 0xee2   :  { %1303 = vmatpush.msra.mxu3 %v1278_v14 }
 0xee3   :  { %1389 = vmatmul.msk.f32.gmra.mxu1 %vm43_vm0, %v1209_v51 }
 0xee4   :  { %1304 = vmatpush.msra.mxu3 %v1277_v4 }
 0xee6   :  { %1305 = vmatpush.msra.mxu3 %v1276_v6 }
 0xf58   :  { %v1242_v7 = vpop.f32.mrf.mxu1 }
 0xf59   :  { %v1243_v11 = vadd.f32 %v1242_v7, %v1218_v8 }
 0xf5b   :  { %1503 = vtanh.f32 %v1243_v11 }
 0xf60   :  { %v1245_v12 = vpop.f32.mrf.mxu1 }
 0xf61   :  { %v1504_v24 = vpop.eup %1503  ;;  %v1246_v13 = vadd.f32 %v1245_v12, %v1218_v8 }
 0xf62   :  { %1390 = vmatmul.msk.f32.vlgmr.msra.gmra.mxu3 %vm43_vm0, %v1504_v24 }
 0xf63   :  { %1505 = vtanh.f32 %v1246_v13 }
 0xf69   :  { %v1506_v3 = vpop.eup %1505 }
 0xf6a   :  { %1391 = vmatmul.msk.f32.gmra.mxu3 %vm43_vm0, %v1506_v3 }
 0xfe5   :  { %v1307_v15 = vpop.f32.mrf.mxu3 }
 0xfe6   :  { %v1308_v16 = vadd.f32 %v1307_v15, %v1250_v27 }
 0xfe8   :  { %1313 = vst [vmem:[%s1978_s5] sm:$0xff] %v1308_v16 }
 0xfed   :  { %v1310_v17 = vpop.f32.mrf.mxu3 }
 0xfee   :  { %v1311_v18 = vadd.f32 %v1310_v17, %v1250_v27 }
 0xff0   :  { %1314 = vst [vmem:[%s1978_s5 + $0x8] sm:$0xff] %v1311_v18 }
 0xff1   :  { %1319 = vsyncpa [#allocation3], 1 }

</bundles_post_ra>
